<compile_context>
chip_gen: v6e
topology: v6e:2x2x1
jax: 0.10.0
libtpu: 0.0.40
codegen_flags: <defaults>
</compile_context>

<pallas_src>
import functools
import math

import jax
import jax.numpy as jnp
from jax import lax
from jax.experimental import pallas as pl
from jax.experimental.pallas import tpu as pltpu


# ----------------------- fused all-layers encoder kernel -----------------------

def _fused_layers_kernel(x_ref, mask_ref,
                         w_in_ref, b_in_ref, w_out_ref, b_out_ref,
                         ln1_g_ref, ln1_b_ref,
                         w1_ref, b1_ref, w2_ref, b2_ref,
                         ln2_g_ref, ln2_b_ref,
                         o_ref, *, num_heads, eps):
    # Blocks:
    #   x_ref, o_ref : (TB*S, D)   token slab for this batch tile
    #   mask_ref     : (TB, S)     additive key-padding mask (0 or -1e9)
    #   weights      : (1, ...)    this layer's stacked slice
    l = pl.program_id(1)
    TB, S = mask_ref.shape
    R, D = o_ref.shape                      # R == TB * S
    H = num_heads
    Dh = D // H
    scale = 1.0 / math.sqrt(Dh)

    # Seed the resident activation from HBM input only at the first layer; for
    # subsequent layers o_ref still holds the previous layer's output (output block
    # index is constant across the layer axis -> buffer stays resident in VMEM).
    @pl.when(l == 0)
    def _():
        o_ref[...] = x_ref[...]

    x = o_ref[...].astype(jnp.float32)      # (R, D) residual kept in f32

    # ---- fused QKV projection over all TB*S rows (bf16 MXU, f32 accumulation) ----
    qkv = jnp.dot(x.astype(jnp.bfloat16), w_in_ref[0],
                  preferred_element_type=jnp.float32) + b_in_ref[0]     # (R, 3D)

    q = qkv[:, :D].reshape(TB, S, D)
    k = qkv[:, D:2 * D].reshape(TB, S, D)
    v = qkv[:, 2 * D:].reshape(TB, S, D)

    # Key-padding mask, broadcast ONCE per batch tile (hoisted out of the head loop).
    mask = mask_ref[...]                                                # (TB, S)
    mask_b = jnp.broadcast_to(mask[:, None, :], (TB, S, S))             # (TB, S, S)

    # ---- multi-head attention (per-head softmax, batched over TB) ----
    heads = []
    for h in range(H):                      # H small; see fori_loop TODO above
        lo = h * Dh
        qh = q[:, :, lo:lo + Dh].astype(jnp.bfloat16)                   # (TB, S, Dh)
        kh = k[:, :, lo:lo + Dh].astype(jnp.bfloat16)
        vh = v[:, :, lo:lo + Dh].astype(jnp.bfloat16)

        s = jnp.einsum('bqd,bkd->bqk', qh, kh,
                       preferred_element_type=jnp.float32) * scale      # (TB, S, S)
        s = s + mask_b
        mx = jnp.max(s, axis=-1, keepdims=True)
        p = jnp.exp(s - mx)
        denom = jnp.sum(p, axis=-1, keepdims=True)
        p = p * pl.reciprocal(denom, approx=True)                       # EUP recip

        oh = jnp.einsum('bqk,bkd->bqd', p.astype(jnp.bfloat16), vh,
                        preferred_element_type=jnp.float32)             # (TB, S, Dh)
        heads.append(oh)

    # Single contract-D output projection (instead of H contract-Dh matmuls).
    o_heads = jnp.concatenate(heads, axis=-1).reshape(R, D)             # (R, D)
    attn = jnp.dot(o_heads.astype(jnp.bfloat16), w_out_ref[0],
                   preferred_element_type=jnp.float32) + b_out_ref[0]

    # ---- residual + LayerNorm1 (f32 stats, biased variance like torch) ----
    h1 = x + attn
    mu1 = jnp.mean(h1, axis=-1, keepdims=True)
    var1 = jnp.mean((h1 - mu1) ** 2, axis=-1, keepdims=True)
    h1 = (h1 - mu1) * lax.rsqrt(var1 + eps) * ln1_g_ref[0] + ln1_b_ref[0]

    # ---- feed-forward (bf16 MXU, ReLU) + residual + LayerNorm2 ----
    ff = jnp.dot(h1.astype(jnp.bfloat16), w1_ref[0],
                 preferred_element_type=jnp.float32)
    ff = jnp.maximum(ff + b1_ref[0], 0.0).astype(jnp.bfloat16)          # keep bf16 copy live
    ff = jnp.dot(ff, w2_ref[0], preferred_element_type=jnp.float32) + b2_ref[0]

    h2 = h1 + ff
    mu2 = jnp.mean(h2, axis=-1, keepdims=True)
    var2 = jnp.mean((h2 - mu2) ** 2, axis=-1, keepdims=True)
    h2 = (h2 - mu2) * lax.rsqrt(var2 + eps) * ln2_g_ref[0] + ln2_b_ref[0]

    # Resident write; flushed to HBM only when the batch-tile index changes.
    o_ref[...] = h2.astype(o_ref.dtype)


# ----------------------------- wrapper / tiling -----------------------------

def _pick_tb(B, S, target_rows=256, min_rows=128):
    """Batch rows per grid step: largest divisor TB of B with TB*S <= target_rows
    (256-row MXU tiles on v6e/v7x), then back off to keep >=2 'parallel' grid steps
    for v7x's two TensorCores if each step would still present >= min_rows rows."""
    best = 1
    for tb in range(1, B + 1):
        if B % tb == 0 and tb * S <= max(target_rows, S):
            best = tb
    if B // best < 2:
        for tb in range(best - 1, 0, -1):
            if B % tb == 0 and tb * S >= min_rows and B // tb >= 2:
                best = tb
                break
    return best


def temporal_transformer(x, params, num_heads, key_padding_mask=None, eps=1e-5):
    """x: (B, S, D) float32; key_padding_mask: (B, S) bool (True = pad/ignore) or None.
    `params` holds per-layer weights stacked along a leading num_layers axis."""
    B, S, D = x.shape
    L = params["w_in"].shape[0]
    F = params["w1"].shape[2]

    if key_padding_mask is None:
        mask_add = jnp.zeros((B, S), jnp.float32)
    else:
        # -1e9 instead of -inf: fully-masked rows give uniform attention instead of
        # PyTorch's NaN (documented divergence).
        mask_add = jnp.where(key_padding_mask, -1e9, 0.0).astype(jnp.float32)

    TB = _pick_tb(B, S)
    R = TB * S
    nb = B // TB

    x2 = x.reshape(B * S, D)                 # token slab; (B*S, D) end-to-end

    def wspec(shape):
        n = len(shape)
        return pl.BlockSpec((1,) + shape, lambda bi, l, _n=n: (l,) + (0,) * _n)

    out = pl.pallas_call(
        functools.partial(_fused_layers_kernel, num_heads=num_heads, eps=eps),
        out_shape=jax.ShapeDtypeStruct((B * S, D), x.dtype),
        grid=(nb, L),                        # batch tiles (parallel) x layers (arbitrary)
        in_specs=[
            pl.BlockSpec((R, D), lambda bi, l: (bi, 0)),     # x (consumed at l == 0)
            pl.BlockSpec((TB, S), lambda bi, l: (bi, 0)),    # additive key-padding mask
            wspec((D, 3 * D)), wspec((1, 3 * D)),            # w_in, b_in
            wspec((D, D)),     wspec((1, D)),                # w_out, b_out
            wspec((1, D)),     wspec((1, D)),                # ln1 gamma, beta
            wspec((D, F)),     wspec((1, F)),                # w1, b1
            wspec((F, D)),     wspec((1, D)),                # w2, b2
            wspec((1, D)),     wspec((1, D)),                # ln2 gamma, beta
        ],
        # Output block index constant across the layer axis -> activation stays
        # resident in VMEM; HBM write-back only when the batch tile changes.
        out_specs=pl.BlockSpec((R, D), lambda bi, l: (bi, 0)),
        compiler_params=pltpu.CompilerParams(
            dimension_semantics=("parallel", "arbitrary"),
            # actual footprint here is ~1 MiB (2x bf16 layer weights ~540 KiB +
            # activations); 48 MiB leaves headroom yet stays under v7x's 64 MiB VMEM.
            vmem_limit_bytes=48 * 1024 * 1024,
        ),
    )(x2, mask_add,
      params["w_in"], params["b_in"],
      params["w_out"], params["b_out"],
      params["ln1_g"], params["ln1_b"],
      params["w1"], params["b1"],
      params["w2"], params["b2"],
      params["ln2_g"], params["ln2_b"])

    return out.reshape(B, S, D)


def init_stacked_params(key, num_layers, d_model, dim_feedforward):
    """Per-layer params stacked along a leading num_layers axis (for the fused kernel)."""
    ks = jax.random.split(key, 4)
    std = 0.02
    bf = jnp.bfloat16
    L, D, F = num_layers, d_model, dim_feedforward
    return {
        # weights stored bf16 (halves weight DMA, feeds the MXU at bf16 rate);
        # biases / LN params stay f32.
        "w_in": (jax.random.normal(ks[0], (L, D, 3 * D), jnp.float32) * std).astype(bf),
        "b_in": jnp.zeros((L, 1, 3 * D), jnp.float32),
        "w_out": (jax.random.normal(ks[1], (L, D, D), jnp.float32) * std).astype(bf),
        "b_out": jnp.zeros((L, 1, D), jnp.float32),
        "w1": (jax.random.normal(ks[2], (L, D, F), jnp.float32) * std).astype(bf),
        "b1": jnp.zeros((L, 1, F), jnp.float32),
        "w2": (jax.random.normal(ks[3], (L, F, D), jnp.float32) * std).astype(bf),
        "b2": jnp.zeros((L, 1, D), jnp.float32),
        "ln1_g": jnp.ones((L, 1, D), jnp.float32),
        "ln1_b": jnp.zeros((L, 1, D), jnp.float32),
        "ln2_g": jnp.ones((L, 1, D), jnp.float32),
        "ln2_b": jnp.zeros((L, 1, D), jnp.float32),
    }


# ----------------------------------- main -----------------------------------

if __name__ == "__main__":
    d_model = 32
    num_layers = 2
    num_heads = 4
    dim_feedforward = 2048  # PyTorch TransformerEncoderLayer default
    B, S = 2, 8

    root = jax.random.PRNGKey(0)
    k_x, k_p = jax.random.split(root)
    x = jax.random.normal(k_x, (B, S, d_model), jnp.float32)
    params = init_stacked_params(k_p, num_layers, d_model, dim_feedforward)

    # Pad the last two timesteps of batch element 1 (True = ignore), like PyTorch's mask.
    key_padding_mask = jnp.zeros((B, S), bool).at[1, -2:].set(True)

    fn = jax.jit(functools.partial(temporal_transformer, num_heads=num_heads))
    out = fn(x, params, key_padding_mask=key_padding_mask)
    out = jax.block_until_ready(out)

    assert out.shape == (B, S, d_model)
    assert bool(jnp.all(jnp.isfinite(out)))
    print("KERNEL_OK")
</pallas_src>

<mosaic_0001>
module attributes {stable_mosaic.version = 11 : i64} {
  func.func @_fused_layers_kernel(%arg0: i32, %arg1: i32, %arg2: memref<16x32xf32, #tpu.memory_space<vmem>>, %arg3: memref<2x8xf32, #tpu.memory_space<vmem>>, %arg4: memref<1x32x96xbf16, #tpu.memory_space<vmem>>, %arg5: memref<1x1x96xf32, #tpu.memory_space<vmem>>, %arg6: memref<1x32x32xbf16, #tpu.memory_space<vmem>>, %arg7: memref<1x1x32xf32, #tpu.memory_space<vmem>>, %arg8: memref<1x1x32xf32, #tpu.memory_space<vmem>>, %arg9: memref<1x1x32xf32, #tpu.memory_space<vmem>>, %arg10: memref<1x32x2048xbf16, #tpu.memory_space<vmem>>, %arg11: memref<1x1x2048xf32, #tpu.memory_space<vmem>>, %arg12: memref<1x2048x32xbf16, #tpu.memory_space<vmem>>, %arg13: memref<1x1x32xf32, #tpu.memory_space<vmem>>, %arg14: memref<1x1x32xf32, #tpu.memory_space<vmem>>, %arg15: memref<1x1x32xf32, #tpu.memory_space<vmem>>, %arg16: memref<16x32xf32, #tpu.memory_space<vmem>>) attributes {dimension_semantics = [#tpu.dimension_semantics<parallel>, #tpu.dimension_semantics<arbitrary>], iteration_bounds = array<i64: 1, 2>, scalar_prefetch = 0 : i64, scratch_operands = 0 : i64, tpu.core_type = #tpu.core_type<tc>, window_params = [{transform_indices = @transform_0, window_bounds = array<i64: 16, 32>}, {transform_indices = @transform_1, window_bounds = array<i64: 2, 8>}, {transform_indices = @transform_2, window_bounds = array<i64: 1, 32, 96>}, {transform_indices = @transform_3, window_bounds = array<i64: 1, 1, 96>}, {transform_indices = @transform_4, window_bounds = array<i64: 1, 32, 32>}, {transform_indices = @transform_5, window_bounds = array<i64: 1, 1, 32>}, {transform_indices = @transform_6, window_bounds = array<i64: 1, 1, 32>}, {transform_indices = @transform_7, window_bounds = array<i64: 1, 1, 32>}, {transform_indices = @transform_8, window_bounds = array<i64: 1, 32, 2048>}, {transform_indices = @transform_9, window_bounds = array<i64: 1, 1, 2048>}, {transform_indices = @transform_10, window_bounds = array<i64: 1, 2048, 32>}, {transform_indices = @transform_11, window_bounds = array<i64: 1, 1, 32>}, {transform_indices = @transform_12, window_bounds = array<i64: 1, 1, 32>}, {transform_indices = @transform_13, window_bounds = array<i64: 1, 1, 32>}, {transform_indices = @transform_14, window_bounds = array<i64: 16, 32>}]} {
    %c0_i32 = arith.constant 0 : i32
    %0 = arith.cmpi eq, %arg1, %c0_i32 : i32
    %1 = arith.extui %0 : i1 to i32
    %c0_i32_0 = arith.constant 0 : i32
    %2 = arith.cmpi ne, %1, %c0_i32_0 : i32
    scf.if %2 {
      %c0_76 = arith.constant 0 : index
      %c0_77 = arith.constant 0 : index
      %193 = vector.load %arg2[%c0_76, %c0_77] : memref<16x32xf32, #tpu.memory_space<vmem>>, vector<16x32xf32>
      %c0_78 = arith.constant 0 : index
      %c0_79 = arith.constant 0 : index
      %194 = vector.load %arg16[%c0_78, %c0_79] : memref<16x32xf32, #tpu.memory_space<vmem>>, vector<16x32xf32>
      tpu.vector_store %arg16[%c0_78, %c0_79], %193 {strides = array<i32>} : memref<16x32xf32, #tpu.memory_space<vmem>>, vector<16x32xf32>,
    } else {
    }
    %c0 = arith.constant 0 : index
    %c0_1 = arith.constant 0 : index
    %3 = vector.load %arg16[%c0, %c0_1] : memref<16x32xf32, #tpu.memory_space<vmem>>, vector<16x32xf32>
    %4 = arith.truncf %3 : vector<16x32xf32> to vector<16x32xbf16>
    %c0_2 = arith.constant 0 : index
    %c0_3 = arith.constant 0 : index
    %c0_4 = arith.constant 0 : index
    %5 = vector.load %arg4[%c0_2, %c0_3, %c0_4] : memref<1x32x96xbf16, #tpu.memory_space<vmem>>, vector<1x32x96xbf16>
    %6 = vector.shape_cast %5 : vector<1x32x96xbf16> to vector<32x96xbf16>
    %cst = arith.constant dense<0.000000e+00> : vector<16x96xf32>
    %7 = tpu.matmul %4, %6, %cst {dimension_numbers = #tpu.dot_dimension_numbers<[1], [0], [0], [1], [0, 0, 1, 1], [], []>} : vector<16x32xbf16>, vector<32x96xbf16>, vector<16x96xf32> -> vector<16x96xf32>
    %c0_5 = arith.constant 0 : index
    %c0_6 = arith.constant 0 : index
    %c0_7 = arith.constant 0 : index
    %8 = vector.load %arg5[%c0_5, %c0_6, %c0_7] : memref<1x1x96xf32, #tpu.memory_space<vmem>>, vector<1x1x96xf32>
    %9 = vector.shape_cast %8 : vector<1x1x96xf32> to vector<1x96xf32>
    %10 = vector.broadcast %9 : vector<1x96xf32> to vector<16x96xf32>
    %11 = arith.addf %7, %10 : vector<16x96xf32>
    %12 = vector.extract_strided_slice %11 {offsets = [0, 0], sizes = [16, 32], strides = [1, 1]} : vector<16x96xf32> to vector<16x32xf32>
    %13 = vector.shape_cast %12 : vector<16x32xf32> to vector<2x8x32xf32>
    %14 = vector.extract_strided_slice %11 {offsets = [0, 32], sizes = [16, 32], strides = [1, 1]} : vector<16x96xf32> to vector<16x32xf32>
    %15 = vector.shape_cast %14 : vector<16x32xf32> to vector<2x8x32xf32>
    %16 = vector.extract_strided_slice %11 {offsets = [0, 64], sizes = [16, 32], strides = [1, 1]} : vector<16x96xf32> to vector<16x32xf32>
    %17 = vector.shape_cast %16 : vector<16x32xf32> to vector<2x8x32xf32>
    %c0_8 = arith.constant 0 : index
    %c0_9 = arith.constant 0 : index
    %18 = vector.load %arg3[%c0_8, %c0_9] : memref<2x8xf32, #tpu.memory_space<vmem>>, vector<2x8xf32>
    %19 = vector.shape_cast %18 : vector<2x8xf32> to vector<2x1x8xf32>
    %20 = vector.shape_cast %19 : vector<2x1x8xf32> to vector<2x1x8xf32>
    %21 = vector.broadcast %20 : vector<2x1x8xf32> to vector<2x8x8xf32>
    %22 = vector.extract_strided_slice %13 {offsets = [0, 0, 0], sizes = [2, 8, 8], strides = [1, 1, 1]} : vector<2x8x32xf32> to vector<2x8x8xf32>
    %23 = arith.truncf %22 : vector<2x8x8xf32> to vector<2x8x8xbf16>
    %24 = vector.extract_strided_slice %15 {offsets = [0, 0, 0], sizes = [2, 8, 8], strides = [1, 1, 1]} : vector<2x8x32xf32> to vector<2x8x8xf32>
    %25 = arith.truncf %24 : vector<2x8x8xf32> to vector<2x8x8xbf16>
    %26 = vector.extract_strided_slice %17 {offsets = [0, 0, 0], sizes = [2, 8, 8], strides = [1, 1, 1]} : vector<2x8x32xf32> to vector<2x8x8xf32>
    %27 = arith.truncf %26 : vector<2x8x8xf32> to vector<2x8x8xbf16>
    "tpu.trace_start"() <{level = 10 : i32, message = "bqd,bkd->bqk"}> : () -> ()
    %cst_10 = arith.constant dense<0.000000e+00> : vector<2x8x8xf32>
    %28 = tpu.matmul %23, %25, %cst_10 {dimension_numbers = #tpu.dot_dimension_numbers<[2], [2], [1], [1], [0, 0, 0, 1, 1, 1], [0], [0]>} : vector<2x8x8xbf16>, vector<2x8x8xbf16>, vector<2x8x8xf32> -> vector<2x8x8xf32>
    "tpu.trace_stop"() : () -> ()
    %cst_11 = arith.constant 0.353553385 : f32
    %29 = vector.broadcast %cst_11 : f32 to vector<2x8x8xf32>
    %30 = arith.mulf %28, %29 : vector<2x8x8xf32>
    %31 = arith.addf %30, %21 : vector<2x8x8xf32>
    %cst_12 = arith.constant dense<0xFF800000> : vector<2x8xf32>
    %32 = vector.multi_reduction <maximumf>, %31, %cst_12 [2] : vector<2x8x8xf32> to vector<2x8xf32>
    %33 = vector.shape_cast %32 : vector<2x8xf32> to vector<2x8x1xf32>
    %34 = vector.broadcast %33 : vector<2x8x1xf32> to vector<2x8x8xf32>
    %35 = arith.subf %31, %34 : vector<2x8x8xf32>
    %36 = math.exp %35 : vector<2x8x8xf32>
    %cst_13 = arith.constant dense<0.000000e+00> : vector<2x8xf32>
    %37 = vector.multi_reduction <add>, %36, %cst_13 [2] : vector<2x8x8xf32> to vector<2x8xf32>
    %38 = vector.shape_cast %37 : vector<2x8xf32> to vector<2x8x1xf32>
    %39 = tpu.reciprocal %38 {approx = true} : vector<2x8x1xf32> -> vector<2x8x1xf32>
    %40 = vector.broadcast %39 : vector<2x8x1xf32> to vector<2x8x8xf32>
    %41 = arith.mulf %36, %40 : vector<2x8x8xf32>
    %42 = arith.truncf %41 : vector<2x8x8xf32> to vector<2x8x8xbf16>
    "tpu.trace_start"() <{level = 10 : i32, message = "bqk,bkd->bqd"}> : () -> ()
    %cst_14 = arith.constant dense<0.000000e+00> : vector<2x8x8xf32>
    %43 = tpu.matmul %42, %27, %cst_14 {dimension_numbers = #tpu.dot_dimension_numbers<[2], [1], [1], [2], [0, 0, 0, 1, 1, 2], [0], [0]>} : vector<2x8x8xbf16>, vector<2x8x8xbf16>, vector<2x8x8xf32> -> vector<2x8x8xf32>
    "tpu.trace_stop"() : () -> ()
    %44 = vector.extract_strided_slice %13 {offsets = [0, 0, 8], sizes = [2, 8, 8], strides = [1, 1, 1]} : vector<2x8x32xf32> to vector<2x8x8xf32>
    %45 = arith.truncf %44 : vector<2x8x8xf32> to vector<2x8x8xbf16>
    %46 = vector.extract_strided_slice %15 {offsets = [0, 0, 8], sizes = [2, 8, 8], strides = [1, 1, 1]} : vector<2x8x32xf32> to vector<2x8x8xf32>
    %47 = arith.truncf %46 : vector<2x8x8xf32> to vector<2x8x8xbf16>
    %48 = vector.extract_strided_slice %17 {offsets = [0, 0, 8], sizes = [2, 8, 8], strides = [1, 1, 1]} : vector<2x8x32xf32> to vector<2x8x8xf32>
    %49 = arith.truncf %48 : vector<2x8x8xf32> to vector<2x8x8xbf16>
    "tpu.trace_start"() <{level = 10 : i32, message = "bqd,bkd->bqk"}> : () -> ()
    %cst_15 = arith.constant dense<0.000000e+00> : vector<2x8x8xf32>
    %50 = tpu.matmul %45, %47, %cst_15 {dimension_numbers = #tpu.dot_dimension_numbers<[2], [2], [1], [1], [0, 0, 0, 1, 1, 1], [0], [0]>} : vector<2x8x8xbf16>, vector<2x8x8xbf16>, vector<2x8x8xf32> -> vector<2x8x8xf32>
    "tpu.trace_stop"() : () -> ()
    %cst_16 = arith.constant 0.353553385 : f32
    %51 = vector.broadcast %cst_16 : f32 to vector<2x8x8xf32>
    %52 = arith.mulf %50, %51 : vector<2x8x8xf32>
    %53 = arith.addf %52, %21 : vector<2x8x8xf32>
    %cst_17 = arith.constant dense<0xFF800000> : vector<2x8xf32>
    %54 = vector.multi_reduction <maximumf>, %53, %cst_17 [2] : vector<2x8x8xf32> to vector<2x8xf32>
    %55 = vector.shape_cast %54 : vector<2x8xf32> to vector<2x8x1xf32>
    %56 = vector.broadcast %55 : vector<2x8x1xf32> to vector<2x8x8xf32>
    %57 = arith.subf %53, %56 : vector<2x8x8xf32>
    %58 = math.exp %57 : vector<2x8x8xf32>
    %cst_18 = arith.constant dense<0.000000e+00> : vector<2x8xf32>
    %59 = vector.multi_reduction <add>, %58, %cst_18 [2] : vector<2x8x8xf32> to vector<2x8xf32>
    %60 = vector.shape_cast %59 : vector<2x8xf32> to vector<2x8x1xf32>
    %61 = tpu.reciprocal %60 {approx = true} : vector<2x8x1xf32> -> vector<2x8x1xf32>
    %62 = vector.broadcast %61 : vector<2x8x1xf32> to vector<2x8x8xf32>
    %63 = arith.mulf %58, %62 : vector<2x8x8xf32>
    %64 = arith.truncf %63 : vector<2x8x8xf32> to vector<2x8x8xbf16>
    "tpu.trace_start"() <{level = 10 : i32, message = "bqk,bkd->bqd"}> : () -> ()
    %cst_19 = arith.constant dense<0.000000e+00> : vector<2x8x8xf32>
    %65 = tpu.matmul %64, %49, %cst_19 {dimension_numbers = #tpu.dot_dimension_numbers<[2], [1], [1], [2], [0, 0, 0, 1, 1, 2], [0], [0]>} : vector<2x8x8xbf16>, vector<2x8x8xbf16>, vector<2x8x8xf32> -> vector<2x8x8xf32>
    "tpu.trace_stop"() : () -> ()
    %66 = vector.extract_strided_slice %13 {offsets = [0, 0, 16], sizes = [2, 8, 8], strides = [1, 1, 1]} : vector<2x8x32xf32> to vector<2x8x8xf32>
    %67 = arith.truncf %66 : vector<2x8x8xf32> to vector<2x8x8xbf16>
    %68 = vector.extract_strided_slice %15 {offsets = [0, 0, 16], sizes = [2, 8, 8], strides = [1, 1, 1]} : vector<2x8x32xf32> to vector<2x8x8xf32>
    %69 = arith.truncf %68 : vector<2x8x8xf32> to vector<2x8x8xbf16>
    %70 = vector.extract_strided_slice %17 {offsets = [0, 0, 16], sizes = [2, 8, 8], strides = [1, 1, 1]} : vector<2x8x32xf32> to vector<2x8x8xf32>
    %71 = arith.truncf %70 : vector<2x8x8xf32> to vector<2x8x8xbf16>
    "tpu.trace_start"() <{level = 10 : i32, message = "bqd,bkd->bqk"}> : () -> ()
    %cst_20 = arith.constant dense<0.000000e+00> : vector<2x8x8xf32>
    %72 = tpu.matmul %67, %69, %cst_20 {dimension_numbers = #tpu.dot_dimension_numbers<[2], [2], [1], [1], [0, 0, 0, 1, 1, 1], [0], [0]>} : vector<2x8x8xbf16>, vector<2x8x8xbf16>, vector<2x8x8xf32> -> vector<2x8x8xf32>
    "tpu.trace_stop"() : () -> ()
    %cst_21 = arith.constant 0.353553385 : f32
    %73 = vector.broadcast %cst_21 : f32 to vector<2x8x8xf32>
    %74 = arith.mulf %72, %73 : vector<2x8x8xf32>
    %75 = arith.addf %74, %21 : vector<2x8x8xf32>
    %cst_22 = arith.constant dense<0xFF800000> : vector<2x8xf32>
    %76 = vector.multi_reduction <maximumf>, %75, %cst_22 [2] : vector<2x8x8xf32> to vector<2x8xf32>
    %77 = vector.shape_cast %76 : vector<2x8xf32> to vector<2x8x1xf32>
    %78 = vector.broadcast %77 : vector<2x8x1xf32> to vector<2x8x8xf32>
    %79 = arith.subf %75, %78 : vector<2x8x8xf32>
    %80 = math.exp %79 : vector<2x8x8xf32>
    %cst_23 = arith.constant dense<0.000000e+00> : vector<2x8xf32>
    %81 = vector.multi_reduction <add>, %80, %cst_23 [2] : vector<2x8x8xf32> to vector<2x8xf32>
    %82 = vector.shape_cast %81 : vector<2x8xf32> to vector<2x8x1xf32>
    %83 = tpu.reciprocal %82 {approx = true} : vector<2x8x1xf32> -> vector<2x8x1xf32>
    %84 = vector.broadcast %83 : vector<2x8x1xf32> to vector<2x8x8xf32>
    %85 = arith.mulf %80, %84 : vector<2x8x8xf32>
    %86 = arith.truncf %85 : vector<2x8x8xf32> to vector<2x8x8xbf16>
    "tpu.trace_start"() <{level = 10 : i32, message = "bqk,bkd->bqd"}> : () -> ()
    %cst_24 = arith.constant dense<0.000000e+00> : vector<2x8x8xf32>
    %87 = tpu.matmul %86, %71, %cst_24 {dimension_numbers = #tpu.dot_dimension_numbers<[2], [1], [1], [2], [0, 0, 0, 1, 1, 2], [0], [0]>} : vector<2x8x8xbf16>, vector<2x8x8xbf16>, vector<2x8x8xf32> -> vector<2x8x8xf32>
    "tpu.trace_stop"() : () -> ()
    %88 = vector.extract_strided_slice %13 {offsets = [0, 0, 24], sizes = [2, 8, 8], strides = [1, 1, 1]} : vector<2x8x32xf32> to vector<2x8x8xf32>
    %89 = arith.truncf %88 : vector<2x8x8xf32> to vector<2x8x8xbf16>
    %90 = vector.extract_strided_slice %15 {offsets = [0, 0, 24], sizes = [2, 8, 8], strides = [1, 1, 1]} : vector<2x8x32xf32> to vector<2x8x8xf32>
    %91 = arith.truncf %90 : vector<2x8x8xf32> to vector<2x8x8xbf16>
    %92 = vector.extract_strided_slice %17 {offsets = [0, 0, 24], sizes = [2, 8, 8], strides = [1, 1, 1]} : vector<2x8x32xf32> to vector<2x8x8xf32>
    %93 = arith.truncf %92 : vector<2x8x8xf32> to vector<2x8x8xbf16>
    "tpu.trace_start"() <{level = 10 : i32, message = "bqd,bkd->bqk"}> : () -> ()
    %cst_25 = arith.constant dense<0.000000e+00> : vector<2x8x8xf32>
    %94 = tpu.matmul %89, %91, %cst_25 {dimension_numbers = #tpu.dot_dimension_numbers<[2], [2], [1], [1], [0, 0, 0, 1, 1, 1], [0], [0]>} : vector<2x8x8xbf16>, vector<2x8x8xbf16>, vector<2x8x8xf32> -> vector<2x8x8xf32>
    "tpu.trace_stop"() : () -> ()
    %cst_26 = arith.constant 0.353553385 : f32
    %95 = vector.broadcast %cst_26 : f32 to vector<2x8x8xf32>
    %96 = arith.mulf %94, %95 : vector<2x8x8xf32>
    %97 = arith.addf %96, %21 : vector<2x8x8xf32>
    %cst_27 = arith.constant dense<0xFF800000> : vector<2x8xf32>
    %98 = vector.multi_reduction <maximumf>, %97, %cst_27 [2] : vector<2x8x8xf32> to vector<2x8xf32>
    %99 = vector.shape_cast %98 : vector<2x8xf32> to vector<2x8x1xf32>
    %100 = vector.broadcast %99 : vector<2x8x1xf32> to vector<2x8x8xf32>
    %101 = arith.subf %97, %100 : vector<2x8x8xf32>
    %102 = math.exp %101 : vector<2x8x8xf32>
    %cst_28 = arith.constant dense<0.000000e+00> : vector<2x8xf32>
    %103 = vector.multi_reduction <add>, %102, %cst_28 [2] : vector<2x8x8xf32> to vector<2x8xf32>
    %104 = vector.shape_cast %103 : vector<2x8xf32> to vector<2x8x1xf32>
    %105 = tpu.reciprocal %104 {approx = true} : vector<2x8x1xf32> -> vector<2x8x1xf32>
    %106 = vector.broadcast %105 : vector<2x8x1xf32> to vector<2x8x8xf32>
    %107 = arith.mulf %102, %106 : vector<2x8x8xf32>
    %108 = arith.truncf %107 : vector<2x8x8xf32> to vector<2x8x8xbf16>
    "tpu.trace_start"() <{level = 10 : i32, message = "bqk,bkd->bqd"}> : () -> ()
    %cst_29 = arith.constant dense<0.000000e+00> : vector<2x8x8xf32>
    %109 = tpu.matmul %108, %93, %cst_29 {dimension_numbers = #tpu.dot_dimension_numbers<[2], [1], [1], [2], [0, 0, 0, 1, 1, 2], [0], [0]>} : vector<2x8x8xbf16>, vector<2x8x8xbf16>, vector<2x8x8xf32> -> vector<2x8x8xf32>
    "tpu.trace_stop"() : () -> ()
    %110 = tpu.concatenate %43, %65, %87, %109 in 2 : vector<2x8x8xf32>, vector<2x8x8xf32>, vector<2x8x8xf32>, vector<2x8x8xf32> -> vector<2x8x32xf32>
    %111 = vector.shape_cast %110 : vector<2x8x32xf32> to vector<16x32xf32>
    %112 = arith.truncf %111 : vector<16x32xf32> to vector<16x32xbf16>
    %c0_30 = arith.constant 0 : index
    %c0_31 = arith.constant 0 : index
    %c0_32 = arith.constant 0 : index
    %113 = vector.load %arg6[%c0_30, %c0_31, %c0_32] : memref<1x32x32xbf16, #tpu.memory_space<vmem>>, vector<1x32x32xbf16>
    %114 = vector.shape_cast %113 : vector<1x32x32xbf16> to vector<32x32xbf16>
    %cst_33 = arith.constant dense<0.000000e+00> : vector<16x32xf32>
    %115 = tpu.matmul %112, %114, %cst_33 {dimension_numbers = #tpu.dot_dimension_numbers<[1], [0], [0], [1], [0, 0, 1, 1], [], []>} : vector<16x32xbf16>, vector<32x32xbf16>, vector<16x32xf32> -> vector<16x32xf32>
    %c0_34 = arith.constant 0 : index
    %c0_35 = arith.constant 0 : index
    %c0_36 = arith.constant 0 : index
    %116 = vector.load %arg7[%c0_34, %c0_35, %c0_36] : memref<1x1x32xf32, #tpu.memory_space<vmem>>, vector<1x1x32xf32>
    %117 = vector.shape_cast %116 : vector<1x1x32xf32> to vector<1x32xf32>
    %118 = vector.broadcast %117 : vector<1x32xf32> to vector<16x32xf32>
    %119 = arith.addf %115, %118 : vector<16x32xf32>
    %120 = arith.addf %3, %119 : vector<16x32xf32>
    %cst_37 = arith.constant dense<0.000000e+00> : vector<16xf32>
    %121 = vector.multi_reduction <add>, %120, %cst_37 [1] : vector<16x32xf32> to vector<16xf32>
    %122 = vector.shape_cast %121 : vector<16xf32> to vector<16x1xf32>
    %cst_38 = arith.constant 3.200000e+01 : f32
    %123 = vector.broadcast %cst_38 : f32 to vector<16x1xf32>
    %124 = arith.divf %122, %123 : vector<16x1xf32>
    %125 = vector.broadcast %124 : vector<16x1xf32> to vector<16x32xf32>
    %126 = arith.subf %120, %125 : vector<16x32xf32>
    %127 = arith.mulf %126, %126 : vector<16x32xf32>
    %cst_39 = arith.constant dense<0.000000e+00> : vector<16xf32>
    %128 = vector.multi_reduction <add>, %127, %cst_39 [1] : vector<16x32xf32> to vector<16xf32>
    %129 = vector.shape_cast %128 : vector<16xf32> to vector<16x1xf32>
    %cst_40 = arith.constant 3.200000e+01 : f32
    %130 = vector.broadcast %cst_40 : f32 to vector<16x1xf32>
    %131 = arith.divf %129, %130 : vector<16x1xf32>
    %132 = vector.broadcast %124 : vector<16x1xf32> to vector<16x32xf32>
    %133 = arith.subf %120, %132 : vector<16x32xf32>
    %cst_41 = arith.constant 9.99999974E-6 : f32
    %134 = vector.broadcast %cst_41 : f32 to vector<16x1xf32>
    %135 = arith.addf %131, %134 : vector<16x1xf32>
    %136 = math.rsqrt %135 : vector<16x1xf32>
    %137 = vector.broadcast %136 : vector<16x1xf32> to vector<16x32xf32>
    %138 = arith.mulf %133, %137 : vector<16x32xf32>
    %c0_42 = arith.constant 0 : index
    %c0_43 = arith.constant 0 : index
    %c0_44 = arith.constant 0 : index
    %139 = vector.load %arg8[%c0_42, %c0_43, %c0_44] : memref<1x1x32xf32, #tpu.memory_space<vmem>>, vector<1x1x32xf32>
    %140 = vector.shape_cast %139 : vector<1x1x32xf32> to vector<1x32xf32>
    %141 = vector.broadcast %140 : vector<1x32xf32> to vector<16x32xf32>
    %142 = arith.mulf %138, %141 : vector<16x32xf32>
    %c0_45 = arith.constant 0 : index
    %c0_46 = arith.constant 0 : index
    %c0_47 = arith.constant 0 : index
    %143 = vector.load %arg9[%c0_45, %c0_46, %c0_47] : memref<1x1x32xf32, #tpu.memory_space<vmem>>, vector<1x1x32xf32>
    %144 = vector.shape_cast %143 : vector<1x1x32xf32> to vector<1x32xf32>
    %145 = vector.broadcast %144 : vector<1x32xf32> to vector<16x32xf32>
    %146 = arith.addf %142, %145 : vector<16x32xf32>
    %147 = arith.truncf %146 : vector<16x32xf32> to vector<16x32xbf16>
    %c0_48 = arith.constant 0 : index
    %c0_49 = arith.constant 0 : index
    %c0_50 = arith.constant 0 : index
    %148 = vector.load %arg10[%c0_48, %c0_49, %c0_50] : memref<1x32x2048xbf16, #tpu.memory_space<vmem>>, vector<1x32x2048xbf16>
    %149 = vector.shape_cast %148 : vector<1x32x2048xbf16> to vector<32x2048xbf16>
    %cst_51 = arith.constant dense<0.000000e+00> : vector<16x2048xf32>
    %150 = tpu.matmul %147, %149, %cst_51 {dimension_numbers = #tpu.dot_dimension_numbers<[1], [0], [0], [1], [0, 0, 1, 1], [], []>} : vector<16x32xbf16>, vector<32x2048xbf16>, vector<16x2048xf32> -> vector<16x2048xf32>
    %c0_52 = arith.constant 0 : index
    %c0_53 = arith.constant 0 : index
    %c0_54 = arith.constant 0 : index
    %151 = vector.load %arg11[%c0_52, %c0_53, %c0_54] : memref<1x1x2048xf32, #tpu.memory_space<vmem>>, vector<1x1x2048xf32>
    %152 = vector.shape_cast %151 : vector<1x1x2048xf32> to vector<1x2048xf32>
    %153 = vector.broadcast %152 : vector<1x2048xf32> to vector<16x2048xf32>
    %154 = arith.addf %150, %153 : vector<16x2048xf32>
    %cst_55 = arith.constant 0.000000e+00 : f32
    %155 = vector.broadcast %cst_55 : f32 to vector<16x2048xf32>
    %156 = arith.maximumf %154, %155 : vector<16x2048xf32>
    %157 = arith.truncf %156 : vector<16x2048xf32> to vector<16x2048xbf16>
    %c0_56 = arith.constant 0 : index
    %c0_57 = arith.constant 0 : index
    %c0_58 = arith.constant 0 : index
    %158 = vector.load %arg12[%c0_56, %c0_57, %c0_58] : memref<1x2048x32xbf16, #tpu.memory_space<vmem>>, vector<1x2048x32xbf16>
    %159 = vector.shape_cast %158 : vector<1x2048x32xbf16> to vector<2048x32xbf16>
    %cst_59 = arith.constant dense<0.000000e+00> : vector<16x32xf32>
    %160 = tpu.matmul %157, %159, %cst_59 {dimension_numbers = #tpu.dot_dimension_numbers<[1], [0], [0], [1], [0, 0, 1, 1], [], []>} : vector<16x2048xbf16>, vector<2048x32xbf16>, vector<16x32xf32> -> vector<16x32xf32>
    %c0_60 = arith.constant 0 : index
    %c0_61 = arith.constant 0 : index
    %c0_62 = arith.constant 0 : index
    %161 = vector.load %arg13[%c0_60, %c0_61, %c0_62] : memref<1x1x32xf32, #tpu.memory_space<vmem>>, vector<1x1x32xf32>
    %162 = vector.shape_cast %161 : vector<1x1x32xf32> to vector<1x32xf32>
    %163 = vector.broadcast %162 : vector<1x32xf32> to vector<16x32xf32>
    %164 = arith.addf %160, %163 : vector<16x32xf32>
    %165 = arith.addf %146, %164 : vector<16x32xf32>
    %cst_63 = arith.constant dense<0.000000e+00> : vector<16xf32>
    %166 = vector.multi_reduction <add>, %165, %cst_63 [1] : vector<16x32xf32> to vector<16xf32>
    %167 = vector.shape_cast %166 : vector<16xf32> to vector<16x1xf32>
    %cst_64 = arith.constant 3.200000e+01 : f32
    %168 = vector.broadcast %cst_64 : f32 to vector<16x1xf32>
    %169 = arith.divf %167, %168 : vector<16x1xf32>
    %170 = vector.broadcast %169 : vector<16x1xf32> to vector<16x32xf32>
    %171 = arith.subf %165, %170 : vector<16x32xf32>
    %172 = arith.mulf %171, %171 : vector<16x32xf32>
    %cst_65 = arith.constant dense<0.000000e+00> : vector<16xf32>
    %173 = vector.multi_reduction <add>, %172, %cst_65 [1] : vector<16x32xf32> to vector<16xf32>
    %174 = vector.shape_cast %173 : vector<16xf32> to vector<16x1xf32>
    %cst_66 = arith.constant 3.200000e+01 : f32
    %175 = vector.broadcast %cst_66 : f32 to vector<16x1xf32>
    %176 = arith.divf %174, %175 : vector<16x1xf32>
    %177 = vector.broadcast %169 : vector<16x1xf32> to vector<16x32xf32>
    %178 = arith.subf %165, %177 : vector<16x32xf32>
    %cst_67 = arith.constant 9.99999974E-6 : f32
    %179 = vector.broadcast %cst_67 : f32 to vector<16x1xf32>
    %180 = arith.addf %176, %179 : vector<16x1xf32>
    %181 = math.rsqrt %180 : vector<16x1xf32>
    %182 = vector.broadcast %181 : vector<16x1xf32> to vector<16x32xf32>
    %183 = arith.mulf %178, %182 : vector<16x32xf32>
    %c0_68 = arith.constant 0 : index
    %c0_69 = arith.constant 0 : index
    %c0_70 = arith.constant 0 : index
    %184 = vector.load %arg14[%c0_68, %c0_69, %c0_70] : memref<1x1x32xf32, #tpu.memory_space<vmem>>, vector<1x1x32xf32>
    %185 = vector.shape_cast %184 : vector<1x1x32xf32> to vector<1x32xf32>
    %186 = vector.broadcast %185 : vector<1x32xf32> to vector<16x32xf32>
    %187 = arith.mulf %183, %186 : vector<16x32xf32>
    %c0_71 = arith.constant 0 : index
    %c0_72 = arith.constant 0 : index
    %c0_73 = arith.constant 0 : index
    %188 = vector.load %arg15[%c0_71, %c0_72, %c0_73] : memref<1x1x32xf32, #tpu.memory_space<vmem>>, vector<1x1x32xf32>
    %189 = vector.shape_cast %188 : vector<1x1x32xf32> to vector<1x32xf32>
    %190 = vector.broadcast %189 : vector<1x32xf32> to vector<16x32xf32>
    %191 = arith.addf %187, %190 : vector<16x32xf32>
    %c0_74 = arith.constant 0 : index
    %c0_75 = arith.constant 0 : index
    %192 = vector.load %arg16[%c0_74, %c0_75] : memref<16x32xf32, #tpu.memory_space<vmem>>, vector<16x32xf32>
    tpu.vector_store %arg16[%c0_74, %c0_75], %191 {strides = array<i32>} : memref<16x32xf32, #tpu.memory_space<vmem>>, vector<16x32xf32>,
    return
  }
  func.func @transform_0(%arg0: i32, %arg1: i32) -> (i32, i32) {
    %c0_i32 = arith.constant 0 : i32
    %c0_i32_0 = arith.constant 0 : i32
    return %arg0, %c0_i32 : i32, i32
  }
  func.func @transform_1(%arg0: i32, %arg1: i32) -> (i32, i32) {
    %c0_i32 = arith.constant 0 : i32
    %c0_i32_0 = arith.constant 0 : i32
    return %arg0, %c0_i32 : i32, i32
  }
  func.func @transform_2(%arg0: i32, %arg1: i32) -> (i32, i32, i32) {
    %c0_i32 = arith.constant 0 : i32
    %c0_i32_0 = arith.constant 0 : i32
    %c0_i32_1 = arith.constant 0 : i32
    return %arg1, %c0_i32, %c0_i32_0 : i32, i32, i32
  }
  func.func @transform_3(%arg0: i32, %arg1: i32) -> (i32, i32, i32) {
    %c0_i32 = arith.constant 0 : i32
    %c0_i32_0 = arith.constant 0 : i32
    %c0_i32_1 = arith.constant 0 : i32
    return %arg1, %c0_i32, %c0_i32_0 : i32, i32, i32
  }
  func.func @transform_4(%arg0: i32, %arg1: i32) -> (i32, i32, i32) {
    %c0_i32 = arith.constant 0 : i32
    %c0_i32_0 = arith.constant 0 : i32
    %c0_i32_1 = arith.constant 0 : i32
    return %arg1, %c0_i32, %c0_i32_0 : i32, i32, i32
  }
  func.func @transform_5(%arg0: i32, %arg1: i32) -> (i32, i32, i32) {
    %c0_i32 = arith.constant 0 : i32
    %c0_i32_0 = arith.constant 0 : i32
    %c0_i32_1 = arith.constant 0 : i32
    return %arg1, %c0_i32, %c0_i32_0 : i32, i32, i32
  }
  func.func @transform_6(%arg0: i32, %arg1: i32) -> (i32, i32, i32) {
    %c0_i32 = arith.constant 0 : i32
    %c0_i32_0 = arith.constant 0 : i32
    %c0_i32_1 = arith.constant 0 : i32
    return %arg1, %c0_i32, %c0_i32_0 : i32, i32, i32
  }
  func.func @transform_7(%arg0: i32, %arg1: i32) -> (i32, i32, i32) {
    %c0_i32 = arith.constant 0 : i32
    %c0_i32_0 = arith.constant 0 : i32
    %c0_i32_1 = arith.constant 0 : i32
    return %arg1, %c0_i32, %c0_i32_0 : i32, i32, i32
  }
  func.func @transform_8(%arg0: i32, %arg1: i32) -> (i32, i32, i32) {
    %c0_i32 = arith.constant 0 : i32
    %c0_i32_0 = arith.constant 0 : i32
    %c0_i32_1 = arith.constant 0 : i32
    return %arg1, %c0_i32, %c0_i32_0 : i32, i32, i32
  }
  func.func @transform_9(%arg0: i32, %arg1: i32) -> (i32, i32, i32) {
    %c0_i32 = arith.constant 0 : i32
    %c0_i32_0 = arith.constant 0 : i32
    %c0_i32_1 = arith.constant 0 : i32
    return %arg1, %c0_i32, %c0_i32_0 : i32, i32, i32
  }
  func.func @transform_10(%arg0: i32, %arg1: i32) -> (i32, i32, i32) {
    %c0_i32 = arith.constant 0 : i32
    %c0_i32_0 = arith.constant 0 : i32
    %c0_i32_1 = arith.constant 0 : i32
    return %arg1, %c0_i32, %c0_i32_0 : i32, i32, i32
  }
  func.func @transform_11(%arg0: i32, %arg1: i32) -> (i32, i32, i32) {
    %c0_i32 = arith.constant 0 : i32
    %c0_i32_0 = arith.constant 0 : i32
    %c0_i32_1 = arith.constant 0 : i32
    return %arg1, %c0_i32, %c0_i32_0 : i32, i32, i32
  }
  func.func @transform_12(%arg0: i32, %arg1: i32) -> (i32, i32, i32) {
    %c0_i32 = arith.constant 0 : i32
    %c0_i32_0 = arith.constant 0 : i32
    %c0_i32_1 = arith.constant 0 : i32
    return %arg1, %c0_i32, %c0_i32_0 : i32, i32, i32
  }
  func.func @transform_13(%arg0: i32, %arg1: i32) -> (i32, i32, i32) {
    %c0_i32 = arith.constant 0 : i32
    %c0_i32_0 = arith.constant 0 : i32
    %c0_i32_1 = arith.constant 0 : i32
    return %arg1, %c0_i32, %c0_i32_0 : i32, i32, i32
  }
  func.func @transform_14(%arg0: i32, %arg1: i32) -> (i32, i32) {
    %c0_i32 = arith.constant 0 : i32
    %c0_i32_0 = arith.constant 0 : i32
    return %arg0, %c0_i32 : i32, i32
  }
}

</mosaic_0001>

<bundles_post_ra>
// kernel: temporal_transformer.1
= control target key start
LH: loop header
LB: loop body
LE: loop exit
PB: predicated region body
PF: predicated region fallthrough
CT: control target
= control target key end

     0   :  { %s5681_s0 = inlined_call_operand.vmem [shape: f32[16,32], index: 0, kind: input, shape index: {}]   ;;  %s5682_s1 = inlined_call_operand.vmem [shape: f32[2,8], index: 1, kind: input, shape index: {}]   ;;  %s5683_s2 = inlined_call_operand.vmem [shape: bf16[2,32,96], index: 2, kind: input, shape index: {}]   ;;  %s5684_s3 = inlined_call_operand.vmem [shape: f32[2,1,96], index: 3, kind: input, shape index: {}]   ;;  %s5685_s4 = inlined_call_operand.vmem [shape: bf16[2,32,32], index: 4, kind: input, shape index: {}]   ;;  %s5686_s5 = inlined_call_operand.vmem [shape: f32[2,1,32], index: 5, kind: input, shape index: {}]   ;;  %s5687_s6 = inlined_call_operand.vmem [shape: f32[2,1,32], index: 6, kind: input, shape index: {}]   ;;  %s5688_s7 = inlined_call_operand.vmem [shape: f32[2,1,32], index: 7, kind: input, shape index: {}]   ;;  %s5689_s8 = inlined_call_operand.vmem [shape: bf16[2,32,2048], index: 8, kind: input, shape index: {}]   ;;  %s5690_s9 = inlined_call_operand.vmem [shape: f32[2,1,2048], index: 9, kind: input, shape index: {}]   ;;  %s5691_s10 = inlined_call_operand.vmem [shape: bf16[2,2048,32], index: 10, kind: input, shape index: {}]   ;;  %s5692_s11 = inlined_call_operand.vmem [shape: f32[2,1,32], index: 11, kind: input, shape index: {}]   ;;  %s5693_s12 = inlined_call_operand.vmem [shape: f32[2,1,32], index: 12, kind: input, shape index: {}]   ;;  %s5694_s13 = inlined_call_operand.vmem [shape: f32[2,1,32], index: 13, kind: input, shape index: {}]   ;;  %s5695_s14 = inlined_call_operand.hbm [shape: f32[16,32], index: 14, kind: output, shape index: {}]  }
   0x1   :  { %5699 = sst [smem:[#allocation8_spill]] %s5681_s0 }
   0x2   :  { %5700 = sst [smem:[#allocation9_spill]] %s5682_s1 }
   0x3   :  { %5701 = sst [smem:[#allocation10_spill]] %s5683_s2 }
   0x4   :  { %5702 = sst [smem:[#allocation11_spill]] %s5685_s4 }
   0x5   :  { %5703 = sst [smem:[#allocation12_spill]] %s5689_s8 }
   0x6   :  { %5704 = sst [smem:[#allocation13_spill]] %s5695_s14 }
   0x7   :  { %19 = vsyncpa [#allocation3], 0  ;;  %s5062_s29 = smov 0   ;;  %s5064_s30 = smov 0  }
   0x8   :  { %s5066_s15 = smov 0  }
   0x9 LB: > { %5705 = sst [smem:[#allocation5_spill]] %s4961_s30  ;;  %s34_s17 = sadd.s32 1, %s4961_s30  ;;  %s4965_s15 = sphi %s5066_s15, %s25_s15   ;;  %s4961_s30 = sphi %s5064_s30, %s5723_s30   ;;  %s4957_s29 = sphi %s5062_s29, %s5722_s29  }
   0xa   : > { %5706 = sst [smem:[#allocation6_spill]] %s4965_s15  ;;  %p35_p0 = scmp.ge.s32.totalorder %s34_s17, 2 }
   0xb   : > { %p4133_p1 = scmp.ge.s32.totalorder %s4965_s15, 1  ;;  %p540_p2 = scmp.lt.s32.totalorder %s4965_s15, 3 }
   0xc   : > { %s5725_s17 = smov (%p35_p0, %s34_s17), 0 }
   0xd   : > { %5707 = sst [smem:[#allocation7_spill]] %s5725_s17  ;;  %p541_p3 = pnand %p4133_p1, %p540_p2 }
   0xe   : > { %p640_p4 = scmp.lt.s32.totalorder (!%p541_p3), %s4957_s29, 1  ;;  %s5708_s2 = sld [smem:[#allocation10_spill]] (!%p541_p3) }
   0xf   : > { %544 = sbr.rel (%p541_p3) target bundleno = 4091 (0xffb), region = 76  ;;  %s5709_s4 = sld [smem:[#allocation11_spill]] (!%p541_p3) }
  0x10   : > { %s5710_s8 = sld [smem:[#allocation12_spill]] (!%p541_p3)  ;;  %p4143_p5 = scmp.ne.s32.totalorder (!%p541_p3), %s4957_s29, 0 }
  0x14   : > { %s5081_s18 = scalar_select %p640_p4, %s4957_s29, 1 }
  0x16   : > { %s4346_s19 = sshll.u32 %s5081_s18, 4  ;;  %s4348_s22 = sshll.u32 %s5081_s18, 8 }
  0x17   : > { %s644_s25 = scalar_lea.vmem %s5708_s2, %s4346_s19  ;;  %s5094_s28 = scalar_lea.vmem %s5709_s4, %s4346_s19 }
  0x18   : > { %s5112_s2 = scalar_lea.vmem %s5710_s8, %s4348_s22  ;;  %s5117_s4 = scalar_lea.vmem %s5690_s9, %s4346_s19 }
  0x19   : > { %s4349_s16 = sshll.u32 %s5081_s18, 10  ;;  %s678_s14 = scalar_lea.vmem %s5692_s11, %s5081_s18 }
  0x1a   : > { %s5127_s0 = scalar_lea.vmem %s5691_s10, %s4349_s16  ;;  %s681_s22 = scalar_lea.vmem %s5693_s12, %s5081_s18 }
  0x1b   : > { %s684_s26 = scalar_lea.vmem %s5694_s13, %s5081_s18  ;;  %690 = sbr.rel (%p4143_p5) target bundleno = 36 (0x24), region = 80 }
  0x1c   : > { %s5711_s8 = sld [smem:[#allocation8_spill]] (!%p4143_p5) }
  0x20   : > { %vm693_vm0 = vcmask 261120  }
  0x22   : > { %v691_v0 = vld [vmem:[%s5711_s8] sm:$0xff]  ;;  %v692_v1 = vld [vmem:[%s5711_s8 + $0x8] sm:$0xff] }
  0x23   : > { %694 = vst.msk [vmem:[#allocation2] sm:$0xff] %vm693_vm0, %v691_v0  ;;  %695 = vst.msk [vmem:[#allocation2 + $0x8] sm:$0xff] %vm693_vm0, %v692_v1 }
  0x24 PF: > { %v4741_v2 = vld [vmem:[%s644_s25 + $0x8] sm:$0xff]   ;;  %v4967_v3 = vmov 0.0   ;;  %v4742_v4 = vld [vmem:[%s644_s25] sm:$0xff]   ;;  %vm4968_vm1 = vmmov 0   ;;  %vm722_vm2 = vcmask 261120   ;;  %s5712_s25 = scalar_lea.vmem %s5684_s3, %s5081_s18  ;;  %s4969_s21 = smov 96   ;;  %v780_v23 = vlaneseq }
  0x25   : > { %4564 = vmatprep.subr.bf16.mxu0 %v4967_v3  ;;  %4572 = vmatprep.subr.bf16.mxu1 %v4967_v3  ;;  %v4144_v8 = vld [vmem:[%s5712_s25] ss:$0 sm:$0xff]  ;;  %vm806_vm3 = vcmask 64512   ;;  %v4970_v21 = vmov 1966171168   ;;  %s5713_s20 = sld [smem:[#allocation9_spill]] }
  0x26   : > { %4565 = vmatpush3.bf16.msra.mxu0 %v4741_v2  ;;  %4568 = vmatprep.mubr.msk.bf16.mxu0 %vm4968_vm1, %v4967_v3  ;;  %v778_v22 = vunpack.c.l.s4 %v4970_v21  ;;  %v5177_v25 = vshrl.u32 %v780_v23, 7  ;;  %s4971_s23 = smov 64   ;;  %s4972_s24 = smov 88   ;;  %vm935_vm4 = vcmask 1043456   ;;  %vm1725_vm5 = vcmask 130048  }
  0x27   : > { %4566 = vmatprep.subr.bf16.mxu0 %v4967_v3  ;;  %4574 = vmatprep.mubr.msk.bf16.mxu1 %vm4968_vm1, %v4967_v3  ;;  %s4973_s19 = smov 120   ;;  %s4974_s27 = smov 56   ;;  %vm1728_vm6 = vcmask 195584  }
  0x28   : > { %v779_v24 = vunpack.c.0.s8 %v778_v22  ;;  %v5184_v30 = vsub.s32 0, %v5177_v25  ;;  %s4975_s30 = smov 80   ;;  %s4976_s17 = smov 112  }
  0x29   : > { %s4977_s1 = smov 48   ;;  %s4978_s29 = smov 72  }
  0x2a   : > { %v696_v5 = vld [vmem:[#allocation2] sm:$0xff]  ;;  %v697_v6 = vld [vmem:[#allocation2 + $0x8] sm:$0xff]  ;;  %4567 = vmatpush3.bf16.msra.mxu0 %v4742_v4  ;;  %v782_v26 = vsub.s32 %v779_v24, %v5177_v25  ;;  %s4979_s25 = smov 104   ;;  %s4981_s16 = smov 8  }
  0x2b   : > { %v698_v7 = vpack.c.bf16 %v697_v6, %v696_v5  ;;  %4578 = vmatprep.subr.bf16.mxu0 %v4967_v3  ;;  %v4148_v27 = vld.sshfl [vmem:[%s5713_s20] sm:$0x11 pattern:$0x75316420]  ;;  %s4982_s15 = smov 16   ;;  %s4983_s20 = smov 24  }
  0x2c   : > { %v776_v28 = vcombine.high %v4148_v27, %v4148_v27  ;;  %v783_v29 = vrot.slane %v4148_v27, %v782_v26 }
  0x2d   : > { %4569 = vmatmul.mubr.msk.bf16.vlgmr.msra.gmra.mxu0 %vm722_vm2, %v698_v7 }
  0x2e   : > { %4580 = vmatprep.mubr.msk.bf16.mxu0 %vm4968_vm1, %v4967_v3  ;;  %v5187_v31 = vrot.slane %v783_v29, %v5184_v30  ;;  %v790_v32 = vrot.slane %v776_v28, %v782_v26 }
  0x30   : > { %v5191_v37 = vrot.slane %v790_v32, %v5184_v30 }
  0xed   : > { %v760_v9 = vpop.f32.mrf.mxu0 }
  0xee   : > { %v761_v10 = vadd.f32 %v4144_v8, %v760_v9 }
  0xef   : > { %v4570_v11 = vpop.f32.mrf.mxu0 }
  0xf0   : > { %v5159_v12 = vpack.c.bf16 %v761_v10, %v761_v10 }
  0xf1   : > { %v763_v13 = vpop.f32.mrf.mxu0 }
  0xf2   : > { %v764_v14 = vadd.f32 %v4144_v8, %v763_v13  ;;  %804 = vrot.lane.b32.xlu0 %v5159_v12, %s4969_s21 }
  0xf3   : > { %v4571_v15 = vpop.f32.mrf.mxu0 }
  0xf4   : > { %v5162_v16 = vpack.c.bf16 %v764_v14, %v764_v14 }
  0xf6   : > { %854 = vrot.lane.b32.xlu0 %v5162_v16, %s4969_s21  ;;  %s4980_s21 = smov 40  }
 0x164   : > { %v805_v17 = vpop.permute.xlu0 %804 }
 0x165   : > { %v811_v18 = vsel %vm806_vm3, %v805_v17, 0 }
 0x166   : > { %4573 = vmatpush3.bf16.xpose.msra.mxu1 %v811_v18 }
 0x167   : > { %4584 = vmatprep.subr.bf16.mxu1 %v4967_v3 }
 0x168   : > { %v855_v19 = vpop.permute.xlu0 %854 }
 0x169   : > { %v860_v20 = vsel %vm806_vm3, %v855_v19, 0 }
 0x16a   : > { %4579 = vmatpush3.bf16.xpose.msra.mxu0 %v860_v20 }
 0x16b   : > { %4590 = vmatprep.subr.bf16.mxu0 %v4967_v3 }
 0x16d   : > { %4575 = vmatmul.mubr.msk.bf16.vlgmr.msra.gmra.mxu1 %vm806_vm3, %v5159_v12 }
 0x16e   : > { %4586 = vmatprep.mubr.msk.bf16.mxu1 %vm4968_vm1, %v4967_v3 }
 0x171   : > { %4581 = vmatmul.mubr.msk.bf16.vlgmr.msra.gmra.mxu0 %vm806_vm3, %v5162_v16 }
 0x172   : > { %4592 = vmatprep.mubr.msk.bf16.mxu0 %vm4968_vm1, %v4967_v3 }
 0x22d   : > { %v847_v33 = vpop.f32.mrf.mxu1 }
 0x22e   : > { %v902_v34 = vmul.f32 0.35355338, %v847_v33 }
 0x22f   : > { %v4576_v35 = vpop.f32.mrf.mxu1 }
 0x230   : > { %v904_v36 = vadd.f32 %v902_v34, %v5187_v31 }
 0x231   : > { %v850_v38 = vpop.f32.mrf.mxu1  ;;  %v896_v39 = vpop.f32.mrf.mxu0 }
 0x232   : > { %v903_v40 = vmul.f32 0.35355338, %v896_v39  ;;  %v906_v41 = vsel %vm806_vm3, %v904_v36, -inf }
 0x233   : > { %907 = vmax.xlane.f32.xlu1 %v906_v41  ;;  %v4577_v42 = vpop.f32.mrf.mxu1  ;;  %v4582_v43 = vpop.f32.mrf.mxu0 }
 0x234   : > { %v905_v44 = vadd.f32 %v903_v40, %v5191_v37 }
 0x235   : > { %v899_v45 = vpop.f32.mrf.mxu0 }
 0x236   : > { %v909_v46 = vsel %vm806_vm3, %v905_v44, -inf }
 0x237   : > { %910 = vmax.xlane.f32.xlu1 %v909_v46  ;;  %v4583_v47 = vpop.f32.mrf.mxu0 }
 0x248   : > { %930 = vrot.lane.b32.xlu1 %v5159_v12, %s4971_s23 }
 0x24c   : > { %979 = vrot.lane.b32.xlu1 %v5162_v16, %s4971_s23 }
 0x250   : > { %1029 = vrot.lane.b32.xlu1 %v5159_v12, %s4972_s24 }
 0x2bc   : > { %v908_v48 = vpop.xlane.xlu1 %907 }
 0x2bd   : > { %v912_v49 = vsub.f32 %v904_v36, %v908_v48 }
 0x2bf   : > { %v914_v50 = vmul.f32 1.442695, %v912_v49 }
 0x2c0   : > { %v911_v51 = vpop.xlane.xlu1 %910 }
 0x2c1   : > { %4873 = vpow2.f32 %v914_v50  ;;  %v913_v52 = vsub.f32 %v905_v44, %v911_v51 }
 0x2c3   : > { %v916_v53 = vmul.f32 1.442695, %v913_v52 }
 0x2c4   : > { %v931_v54 = vpop.permute.xlu1 %930 }
 0x2c5   : > { %4875 = vpow2.f32 %v916_v53  ;;  %v937_v55 = vsel %vm935_vm4, %v931_v54, 0 }
 0x2c6   : > { %4585 = vmatpush3.bf16.msra.mxu1 %v937_v55 }
 0x2c7   : > { %4596 = vmatprep.subr.bf16.mxu1 %v4967_v3 }
 0x2c8   : > { %v980_v56 = vpop.permute.xlu1 %979 }
 0x2c9   : > { %v985_v57 = vsel %vm935_vm4, %v980_v56, 0 }
 0x2ca   : > { %4591 = vmatpush3.bf16.msra.mxu0 %v985_v57 }
 0x2cb   : > { %4602 = vmatprep.subr.bf16.mxu0 %v4967_v3 }
 0x2cc   : > { %v1030_v62 = vpop.permute.xlu1 %1029 }
 0x2cd   : > { %v1035_v6 = vsel %vm806_vm3, %v1030_v62, 0 }
 0x2ce   : > { %v4874_v58 = vpop.eup %4873 }
 0x2cf   : > { %v918_v59 = vsel %vm806_vm3, %v4874_v58, 0.0 }
 0x2d0   : > { %919 = vadd.xlane.f32.xlu0 %v918_v59 }
 0x2d2   : > { %v4876_v60 = vpop.eup %4875 }
 0x2d3   : > { %v921_v61 = vsel %vm806_vm3, %v4876_v60, 0.0 }
 0x2d4   : > { %922 = vadd.xlane.f32.xlu1 %v921_v61 }
 0x2e5   : > { %1079 = vrot.lane.b32.xlu1 %v5162_v16, %s4972_s24  ;;  %s5714_s24 = scalar_lea.vmem %s5686_s5, %s5081_s18 }
 0x2e6   : > { %1027 = vrot.lane.b32.xlu0 %v5159_v12, %s4973_s19 }
 0x2e9   : > { %1077 = vrot.lane.b32.xlu1 %v5162_v16, %s4973_s19 }
 0x359   : > { %v920_v63 = vpop.xlane.xlu0 %919 }
 0x35a   : > { %4877 = vrcp.f32 %v920_v63 }
 0x35d   : > { %v923_v0 = vpop.xlane.xlu1 %922  ;;  %v1028_v11 = vpop.permute.xlu0 %1027 }
 0x35e   : > { %4879 = vrcp.f32 %v923_v0 }
 0x361   : > { %v1080_v8 = vpop.permute.xlu1 %1079 }
 0x362   : > { %v1085_v10 = vsel %vm806_vm3, %v1080_v8, 0 }
 0x365   : > { %v1078_v13 = vpop.permute.xlu1 %1077 }
 0x367   : > { %v4878_v1 = vpop.eup %4877 }
 0x368   : > { %v926_v2 = vmul.f32 %v4878_v1, %v4874_v58 }
 0x36a   : > { %v928_v4 = vpack.c.bf16 %v926_v2, %v926_v2 }
 0x36b   : > { %v4880_v5 = vpop.eup %4879 }
 0x36c   : > { %4587 = vmatmul.mubr.msk.bf16.vlgmr.msra.gmra.mxu1 %vm806_vm3, %v928_v4  ;;  %v927_v7 = vmul.f32 %v4880_v5, %v4876_v60 }
 0x36d   : > { %4597 = vmatpush3.bf16.xpose.msra.mxu1 %v1035_v6  ;;  %4598 = vmatprep.mubr.msk.bf16.mxu1 %vm4968_vm1, %v4967_v3 }
 0x36e   : > { %v929_v9 = vpack.c.bf16 %v927_v7, %v927_v7  ;;  %4608 = vmatprep.subr.bf16.mxu1 %v4967_v3 }
 0x370   : > { %4593 = vmatmul.mubr.msk.bf16.vlgmr.msra.gmra.mxu0 %vm806_vm3, %v929_v9 }
 0x371   : > { %4603 = vmatpush3.bf16.xpose.msra.mxu0 %v1085_v10  ;;  %4604 = vmatprep.mubr.msk.bf16.mxu0 %vm4968_vm1, %v4967_v3 }
 0x372   : > { %4614 = vmatprep.subr.bf16.mxu0 %v4967_v3 }
 0x374   : > { %4599 = vmatmul.mubr.msk.bf16.vlgmr.msra.gmra.mxu1 %vm806_vm3, %v1028_v11 }
 0x375   : > { %4610 = vmatprep.mubr.msk.bf16.mxu1 %vm4968_vm1, %v4967_v3 }
 0x378   : > { %4605 = vmatmul.mubr.msk.bf16.vlgmr.msra.gmra.mxu0 %vm806_vm3, %v1078_v13 }
 0x379   : > { %4616 = vmatprep.mubr.msk.bf16.mxu0 %vm4968_vm1, %v4967_v3 }
 0x42c   : > { %v5224_v14 = vpop.f32.mrf.mxu1 }
 0x42e   : > { %v4588_v15 = vpop.f32.mrf.mxu1 }
 0x430   : > { %v976_v17 = vpop.f32.mrf.mxu1  ;;  %v5226_v18 = vpop.f32.mrf.mxu0 }
 0x432   : > { %v4589_v19 = vpop.f32.mrf.mxu1  ;;  %v4594_v20 = vpop.f32.mrf.mxu0 }
 0x434   : > { %v1024_v21 = vpop.f32.mrf.mxu0  ;;  %v1071_v22 = vpop.f32.mrf.mxu1 }
 0x435   : > { %v1127_v23 = vmul.f32 0.35355338, %v1071_v22 }
 0x436   : > { %v4595_v24 = vpop.f32.mrf.mxu0  ;;  %v4600_v26 = vpop.f32.mrf.mxu1 }
 0x437   : > { %v1129_v27 = vadd.f32 %v1127_v23, %v5187_v31 }
 0x438   : > { %v1074_v28 = vpop.f32.mrf.mxu1  ;;  %v1121_v29 = vpop.f32.mrf.mxu0 }
 0x439   : > { %v1128_v32 = vmul.f32 0.35355338, %v1121_v29  ;;  %v1131_v33 = vsel %vm806_vm3, %v1129_v27, -inf }
 0x43a   : > { %1132 = vmax.xlane.f32.xlu1 %v1131_v33  ;;  %v4601_v34 = vpop.f32.mrf.mxu1  ;;  %v4606_v35 = vpop.f32.mrf.mxu0 }
 0x43b   : > { %v1130_v36 = vadd.f32 %v1128_v32, %v5191_v37 }
 0x43c   : > { %v1124_v38 = vpop.f32.mrf.mxu0 }
 0x43d   : > { %v1134_v39 = vsel %vm806_vm3, %v1130_v36, -inf }
 0x43e   : > { %1135 = vmax.xlane.f32.xlu0 %v1134_v39  ;;  %v4607_v40 = vpop.f32.mrf.mxu0 }
 0x44b   : > { %1155 = vrot.lane.b32.xlu1 %v5159_v12, %s4974_s27 }
 0x44f   : > { %1253 = vrot.lane.b32.xlu1 %v5159_v12, %s4975_s30 }
 0x454   : > { %1203 = vrot.lane.b32.xlu0 %v5162_v16, %s4974_s27 }
 0x458   : > { %1251 = vrot.lane.b32.xlu0 %v5159_v12, %s4976_s17 }
 0x4c3   : > { %v1133_v41 = vpop.xlane.xlu1 %1132 }
 0x4c4   : > { %v1137_v42 = vsub.f32 %v1129_v27, %v1133_v41 }
 0x4c6   : > { %v1139_v43 = vmul.f32 1.442695, %v1137_v42 }
 0x4c7   : > { %v1156_v44 = vpop.permute.xlu1 %1155  ;;  %v1136_v45 = vpop.xlane.xlu0 %1135 }
 0x4c8   : > { %4881 = vpow2.f32 %v1139_v43  ;;  %v1161_v46 = vsel %vm935_vm4, %v1156_v44, 0  ;;  %v1138_v47 = vsub.f32 %v1130_v36, %v1136_v45 }
 0x4c9   : > { %4609 = vmatpush3.bf16.msra.mxu1 %v1161_v46 }
 0x4ca   : > { %v1141_v48 = vmul.f32 1.442695, %v1138_v47  ;;  %4620 = vmatprep.subr.bf16.mxu1 %v4967_v3 }
 0x4cb   : > { %v1204_v49 = vpop.permute.xlu0 %1203  ;;  %v1254_v55 = vpop.permute.xlu1 %1253 }
 0x4cc   : > { %4883 = vpow2.f32 %v1141_v48  ;;  %v1209_v50 = vsel %vm935_vm4, %v1204_v49, 0  ;;  %v1259_v62 = vsel %vm806_vm3, %v1254_v55, 0 }
 0x4cd   : > { %4615 = vmatpush3.bf16.msra.mxu0 %v1209_v50 }
 0x4ce   : > { %4626 = vmatprep.subr.bf16.mxu0 %v4967_v3 }
 0x4cf   : > { %v1252_v4 = vpop.permute.xlu0 %1251 }
 0x4d5   : > { %v4882_v51 = vpop.eup %4881 }
 0x4d6   : > { %v1143_v52 = vsel %vm806_vm3, %v4882_v51, 0.0 }
 0x4d7   : > { %1144 = vadd.xlane.f32.xlu1 %v1143_v52 }
 0x4d9   : > { %v4884_v53 = vpop.eup %4883 }
 0x4da   : > { %v1146_v54 = vsel %vm806_vm3, %v4884_v53, 0.0 }
 0x4db   : > { %1147 = vadd.xlane.f32.xlu1 %v1146_v54 }
 0x4ec   : > { %1303 = vrot.lane.b32.xlu1 %v5162_v16, %s4975_s30  ;;  %s5715_s30 = scalar_lea.vmem %s5687_s6, %s5081_s18 }
 0x4f0   : > { %1301 = vrot.lane.b32.xlu1 %v5162_v16, %s4976_s17 }
 0x560   : > { %v1145_v56 = vpop.xlane.xlu1 %1144 }
 0x561   : > { %4885 = vrcp.f32 %v1145_v56 }
 0x564   : > { %v1148_v57 = vpop.xlane.xlu1 %1147 }
 0x565   : > { %4887 = vrcp.f32 %v1148_v57 }
 0x568   : > { %v1304_v0 = vpop.permute.xlu1 %1303 }
 0x569   : > { %v1309_v2 = vsel %vm806_vm3, %v1304_v0, 0 }
 0x56c   : > { %v1302_v5 = vpop.permute.xlu1 %1301 }
 0x56e   : > { %v4886_v58 = vpop.eup %4885 }
 0x56f   : > { %v1151_v59 = vmul.f32 %v4886_v58, %v4882_v51 }
 0x571   : > { %v1153_v60 = vpack.c.bf16 %v1151_v59, %v1151_v59 }
 0x572   : > { %v4888_v61 = vpop.eup %4887 }
 0x573   : > { %4611 = vmatmul.mubr.msk.bf16.vlgmr.msra.gmra.mxu1 %vm806_vm3, %v1153_v60  ;;  %v1152_v63 = vmul.f32 %v4888_v61, %v4884_v53 }
 0x574   : > { %4621 = vmatpush3.bf16.xpose.msra.mxu1 %v1259_v62  ;;  %4622 = vmatprep.mubr.msk.bf16.mxu1 %vm4968_vm1, %v4967_v3 }
 0x575   : > { %v1154_v1 = vpack.c.bf16 %v1152_v63, %v1152_v63  ;;  %4632 = vmatprep.subr.bf16.mxu1 %v4967_v3 }
 0x577   : > { %4617 = vmatmul.mubr.msk.bf16.vlgmr.msra.gmra.mxu0 %vm806_vm3, %v1154_v1 }
 0x578   : > { %4627 = vmatpush3.bf16.xpose.msra.mxu0 %v1309_v2  ;;  %4628 = vmatprep.mubr.msk.bf16.mxu0 %vm4968_vm1, %v4967_v3 }
 0x579   : > { %4638 = vmatprep.subr.bf16.mxu0 %v4967_v3 }
 0x57b   : > { %4623 = vmatmul.mubr.msk.bf16.vlgmr.msra.gmra.mxu1 %vm806_vm3, %v1252_v4 }
 0x57c   : > { %4634 = vmatprep.mubr.msk.bf16.mxu1 %vm4968_vm1, %v4967_v3 }
 0x57f   : > { %4629 = vmatmul.mubr.msk.bf16.vlgmr.msra.gmra.mxu0 %vm806_vm3, %v1302_v5 }
 0x580   : > { %4640 = vmatprep.mubr.msk.bf16.mxu0 %vm4968_vm1, %v4967_v3 }
 0x633   : > { %v5260_v6 = vpop.f32.mrf.mxu1 }
 0x635   : > { %v4612_v7 = vpop.f32.mrf.mxu1 }
 0x637   : > { %v1200_v8 = vpop.f32.mrf.mxu1  ;;  %v5262_v9 = vpop.f32.mrf.mxu0 }
 0x638   : > { %v4726_v10 = vpack.i.bf16 %v5262_v9, %v5260_v6 }
 0x639   : > { %v4613_v11 = vpop.f32.mrf.mxu1  ;;  %v4618_v13 = vpop.f32.mrf.mxu0 }
 0x63b   : > { %v1248_v15 = vpop.f32.mrf.mxu0  ;;  %v1295_v17 = vpop.f32.mrf.mxu1 }
 0x63c   : > { %v1351_v19 = vmul.f32 0.35355338, %v1295_v17 }
 0x63d   : > { %v4619_v20 = vpop.f32.mrf.mxu0  ;;  %v4624_v21 = vpop.f32.mrf.mxu1 }
 0x63e   : > { %v1353_v22 = vadd.f32 %v1351_v19, %v5187_v31 }
 0x63f   : > { %v1298_v23 = vpop.f32.mrf.mxu1  ;;  %v1345_v24 = vpop.f32.mrf.mxu0 }
 0x640   : > { %v1352_v26 = vmul.f32 0.35355338, %v1345_v24  ;;  %v1355_v27 = vsel %vm806_vm3, %v1353_v22, -inf }
 0x641   : > { %1356 = vmax.xlane.f32.xlu0 %v1355_v27  ;;  %v4625_v28 = vpop.f32.mrf.mxu1  ;;  %v4630_v29 = vpop.f32.mrf.mxu0 }
 0x642   : > { %v1354_v32 = vadd.f32 %v1352_v26, %v5191_v37 }
 0x643   : > { %v1348_v33 = vpop.f32.mrf.mxu0 }
 0x644   : > { %v1358_v34 = vsel %vm806_vm3, %v1354_v32, -inf }
 0x645   : > { %1359 = vmax.xlane.f32.xlu1 %v1358_v34  ;;  %v4631_v35 = vpop.f32.mrf.mxu0 }
 0x656   : > { %1379 = vrot.lane.b32.xlu1 %v5159_v12, %s4977_s1 }
 0x65a   : > { %1477 = vrot.lane.b32.xlu1 %v5159_v12, %s4978_s29 }
 0x65e   : > { %1527 = vrot.lane.b32.xlu1 %v5162_v16, %s4978_s29  ;;  %s5716_s29 = scalar_lea.vmem %s5688_s7, %s5081_s18 }
 0x662   : > { %1525 = vrot.lane.b32.xlu1 %v5162_v16, %s4979_s25 }
 0x6ca   : > { %v1357_v36 = vpop.xlane.xlu0 %1356 }
 0x6cb   : > { %v1361_v38 = vsub.f32 %v1353_v22, %v1357_v36 }
 0x6cd   : > { %v1363_v39 = vmul.f32 1.442695, %v1361_v38 }
 0x6ce   : > { %v1360_v40 = vpop.xlane.xlu1 %1359 }
 0x6cf   : > { %4889 = vpow2.f32 %v1363_v39  ;;  %v1362_v41 = vsub.f32 %v1354_v32, %v1360_v40 }
 0x6d1   : > { %v1365_v42 = vmul.f32 1.442695, %v1362_v41 }
 0x6d2   : > { %v1380_v43 = vpop.permute.xlu1 %1379 }
 0x6d3   : > { %4891 = vpow2.f32 %v1365_v42  ;;  %v1385_v44 = vsel %vm935_vm4, %v1380_v43, 0 }
 0x6d4   : > { %4633 = vmatpush3.bf16.msra.mxu1 %v1385_v44 }
 0x6d5   : > { %4644 = vmatprep.subr.bf16.mxu1 %v4967_v3 }
 0x6d6   : > { %v1478_v54 = vpop.permute.xlu1 %1477 }
 0x6d7   : > { %v1483_v58 = vsel %vm806_vm3, %v1478_v54, 0 }
 0x6da   : > { %v1528_v60 = vpop.permute.xlu1 %1527 }
 0x6db   : > { %v1533_v62 = vsel %vm806_vm3, %v1528_v60, 0 }
 0x6dc   : > { %v4890_v45 = vpop.eup %4889 }
 0x6dd   : > { %v1367_v46 = vsel %vm806_vm3, %v4890_v45, 0.0 }
 0x6de   : > { %1368 = vadd.xlane.f32.xlu0 %v1367_v46  ;;  %v1526_v0 = vpop.permute.xlu1 %1525 }
 0x6e0   : > { %v4892_v47 = vpop.eup %4891 }
 0x6e1   : > { %v1370_v48 = vsel %vm806_vm3, %v4892_v47, 0.0 }
 0x6e2   : > { %1371 = vadd.xlane.f32.xlu0 %v1370_v48 }
 0x6f8   : > { %1427 = vrot.lane.b32.xlu0 %v5162_v16, %s4977_s1 }
 0x6fc   : > { %1475 = vrot.lane.b32.xlu0 %v5159_v12, %s4979_s25 }
 0x767   : > { %v1369_v49 = vpop.xlane.xlu0 %1368 }
 0x768   : > { %4893 = vrcp.f32 %v1369_v49 }
 0x76b   : > { %v1372_v50 = vpop.xlane.xlu0 %1371 }
 0x76c   : > { %4895 = vrcp.f32 %v1372_v50 }
 0x76f   : > { %v1428_v51 = vpop.permute.xlu0 %1427 }
 0x770   : > { %v1433_v52 = vsel %vm935_vm4, %v1428_v51, 0  ;;  %v4743_v51 = vld [vmem:[%s5094_s28 + $0x8] sm:$0xff]  }
 0x771   : > { %4639 = vmatpush3.bf16.msra.mxu0 %v1433_v52  ;;  %v4744_v52 = vld [vmem:[%s5094_s28] sm:$0xff]  }
 0x772   : > { %4650 = vmatprep.subr.bf16.mxu0 %v4967_v3 }
 0x773   : > { %v1476_v63 = vpop.permute.xlu0 %1475 }
 0x775   : > { %v4894_v53 = vpop.eup %4893 }
 0x776   : > { %v1375_v55 = vmul.f32 %v4894_v53, %v4890_v45 }
 0x778   : > { %v1377_v56 = vpack.c.bf16 %v1375_v55, %v1375_v55 }
 0x779   : > { %v4896_v57 = vpop.eup %4895 }
 0x77a   : > { %4635 = vmatmul.mubr.msk.bf16.vlgmr.msra.gmra.mxu1 %vm806_vm3, %v1377_v56  ;;  %v1376_v59 = vmul.f32 %v4896_v57, %v4892_v47 }
 0x77b   : > { %4645 = vmatpush3.bf16.xpose.msra.mxu1 %v1483_v58  ;;  %4646 = vmatprep.mubr.msk.bf16.mxu1 %vm4968_vm1, %v4967_v3 }
 0x77c   : > { %v1378_v61 = vpack.c.bf16 %v1376_v59, %v1376_v59  ;;  %4656 = vmatprep.subr.bf16.mxu1 %v4967_v3 }
 0x77e   : > { %4641 = vmatmul.mubr.msk.bf16.vlgmr.msra.gmra.mxu0 %vm806_vm3, %v1378_v61 }
 0x77f   : > { %4651 = vmatpush3.bf16.xpose.msra.mxu0 %v1533_v62  ;;  %4652 = vmatprep.mubr.msk.bf16.mxu0 %vm4968_vm1, %v4967_v3 }
 0x780   : > { %4662 = vmatprep.subr.bf16.mxu0 %v4967_v3 }
 0x782   : > { %4647 = vmatmul.mubr.msk.bf16.vlgmr.msra.gmra.mxu1 %vm806_vm3, %v1476_v63 }
 0x783   : > { %4658 = vmatprep.mubr.msk.bf16.mxu1 %vm4968_vm1, %v4967_v3 }
 0x786   : > { %4653 = vmatmul.mubr.msk.bf16.vlgmr.msra.gmra.mxu0 %vm806_vm3, %v1526_v0 }
 0x787   : > { %4664 = vmatprep.mubr.msk.bf16.mxu0 %vm4968_vm1, %v4967_v3 }
 0x83a   : > { %v1421_v1 = vpop.f32.mrf.mxu1 }
 0x83c   : > { %v4636_v2 = vpop.f32.mrf.mxu1 }
 0x83e   : > { %v1424_v4 = vpop.f32.mrf.mxu1  ;;  %v1469_v5 = vpop.f32.mrf.mxu0 }
 0x840   : > { %v4637_v7 = vpop.f32.mrf.mxu1  ;;  %v4642_v8 = vpop.f32.mrf.mxu0 }
 0x842   : > { %v1472_v11 = vpop.f32.mrf.mxu0  ;;  %v1519_v13 = vpop.f32.mrf.mxu1 }
 0x843   : > { %v1575_v15 = vmul.f32 0.35355338, %v1519_v13 }
 0x844   : > { %v4643_v17 = vpop.f32.mrf.mxu0  ;;  %v4648_v19 = vpop.f32.mrf.mxu1 }
 0x845   : > { %v1577_v20 = vadd.f32 %v1575_v15, %v5187_v31  ;;  %v4731_v31 = vpack.i.bf16 %v1469_v5, %v1421_v1 }
 0x846   : > { %v1522_v21 = vpop.f32.mrf.mxu1  ;;  %v1569_v22 = vpop.f32.mrf.mxu0 }
 0x847   : > { %v1576_v23 = vmul.f32 0.35355338, %v1569_v22  ;;  %v1579_v24 = vsel %vm806_vm3, %v1577_v20, -inf  ;;  %v4165_v21 = vld [vmem:[%s5714_s24] ss:$0 sm:$0xff] }
 0x848   : > { %1580 = vmax.xlane.f32.xlu0 %v1579_v24  ;;  %v4649_v26 = vpop.f32.mrf.mxu1  ;;  %v4654_v27 = vpop.f32.mrf.mxu0  ;;  %v4913_v24 = vld [vmem:[#allocation2] sm:$0xff] }
 0x849   : > { %v1578_v28 = vadd.f32 %v1576_v23, %v5191_v37 }
 0x84a   : > { %v1572_v29 = vpop.f32.mrf.mxu0 }
 0x84b   : > { %v1582_v32 = vsel %vm806_vm3, %v1578_v28, -inf }
 0x84c   : > { %1583 = vmax.xlane.f32.xlu1 %v1582_v32  ;;  %v4655_v33 = vpop.f32.mrf.mxu0  ;;  %v4914_v32 = vld [vmem:[#allocation2 + $0x8] sm:$0xff] }
 0x85d   : > { %1603 = vrot.lane.b32.xlu1 %v5159_v12, %s4980_s21 }
 0x861   : > { %4727 = vrot.lane.b32.xlu1 %v4726_v10, %s4981_s16 }
 0x865   : > { %4732 = vrot.lane.b32.xlu1 %v4731_v31, %s4982_s15 }
 0x8d1   : > { %v1581_v34 = vpop.xlane.xlu0 %1580 }
 0x8d2   : > { %v1585_v35 = vsub.f32 %v1577_v20, %v1581_v34 }
 0x8d4   : > { %v1587_v37 = vmul.f32 1.442695, %v1585_v35 }
 0x8d5   : > { %v1584_v36 = vpop.xlane.xlu1 %1583 }
 0x8d6   : > { %4897 = vpow2.f32 %v1587_v37  ;;  %v1586_v38 = vsub.f32 %v1578_v28, %v1584_v36 }
 0x8d8   : > { %v1589_v39 = vmul.f32 1.442695, %v1586_v38 }
 0x8d9   : > { %v1604_v40 = vpop.permute.xlu1 %1603 }
 0x8da   : > { %4899 = vpow2.f32 %v1589_v39  ;;  %v1609_v12 = vsel %vm935_vm4, %v1604_v40, 0 }
 0x8db   : > { %4657 = vmatpush3.bf16.msra.mxu1 %v1609_v12 }
 0x8dc   : > { %4668 = vmatprep.subr.bf16.mxu1 %v4967_v3 }
 0x8dd   : > { %v4728_v62 = vpop.permute.xlu1 %4727 }
 0x8de   : > { %v4730_v0 = vunpack.i.h.bf16 %v4728_v62  ;;  %v4729_v1 = vunpack.i.l.bf16 %v4728_v62 }
 0x8e0   : > { %v1724_v5 = vsel %vm806_vm3, %v5226_v18, %v4730_v0  ;;  %v1723_v7 = vsel %vm806_vm3, %v5224_v14, %v4729_v1 }
 0x8e1   : > { %v4733_v63 = vpop.permute.xlu1 %4732 }
 0x8e2   : > { %v4735_v2 = vunpack.i.h.bf16 %v4733_v63 }
 0x8e3   : > { %v4898_v41 = vpop.eup %4897 }
 0x8e4   : > { %v1591_v6 = vsel %vm806_vm3, %v4898_v41, 0.0  ;;  %v1727_v15 = vsel %vm1725_vm5, %v1724_v5, %v4735_v2 }
 0x8e5   : > { %1592 = vadd.xlane.f32.xlu0 %v1591_v6 }
 0x8e7   : > { %v4900_v9 = vpop.eup %4899 }
 0x8e8   : > { %v1594_v10 = vsel %vm806_vm3, %v4900_v9, 0.0 }
 0x8e9   : > { %1595 = vadd.xlane.f32.xlu0 %v1594_v10  ;;  %v1871_v10 = vld [vmem:[%s5112_s2 + $0xc0] sm:$0xff] }
 0x8ff   : > { %1651 = vrot.lane.b32.xlu0 %v5162_v16, %s4980_s21 }
 0x96e   : > { %v1593_v42 = vpop.xlane.xlu0 %1592 }
 0x96f   : > { %4901 = vrcp.f32 %v1593_v42  ;;  %v1864_v42 = vld [vmem:[%s5112_s2 + $0x88] sm:$0xff] }
 0x972   : > { %v1596_v43 = vpop.xlane.xlu0 %1595 }
 0x973   : > { %4903 = vrcp.f32 %v1596_v43 }
 0x976   : > { %v1652_v44 = vpop.permute.xlu0 %1651 }
 0x977   : > { %v1657_v45 = vsel %vm935_vm4, %v1652_v44, 0  ;;  %v1872_v44 = vld [vmem:[%s5112_s2 + $0xc8] sm:$0xff] }
 0x978   : > { %4663 = vmatpush3.bf16.msra.mxu0 %v1657_v45 }
 0x97c   : > { %v4902_v46 = vpop.eup %4901 }
 0x97d   : > { %v1599_v47 = vmul.f32 %v4902_v46, %v4898_v41  ;;  %v4189_v46 = vcombine.low %v1864_v42, %v1872_v44 }
 0x97f   : > { %v1601_v48 = vpack.c.bf16 %v1599_v47, %v1599_v47  ;;  %v4190_v47 = vcombine.high %v1864_v42, %v1872_v44  ;;  %v1869_v42 = vld [vmem:[%s5112_s2 + $0xb0] sm:$0xff]  ;;  %v1870_v44 = vld [vmem:[%s5112_s2 + $0xb8] sm:$0xff] }
 0x980   : > { %v4904_v49 = vpop.eup %4903 }
 0x981   : > { %4659 = vmatmul.mubr.msk.bf16.vlgmr.msra.gmra.mxu1 %vm806_vm3, %v1601_v48  ;;  %v1600_v50 = vmul.f32 %v4904_v49, %v4900_v9  ;;  %v1863_v9 = vld [vmem:[%s5112_s2 + $0x80] sm:$0xff] }
 0x982   : > { %4672 = vmatprep.mubr.msk.bf16.mxu1 %vm4968_vm1, %v4967_v3  ;;  %4669 = vmatpush3.bf16.msra.mxu1 %v4743_v51  ;;  %v4188_v43 = vcombine.high %v1863_v9, %v1871_v10  ;;  %v4187_v45 = vcombine.low %v1863_v9, %v1871_v10  ;;  %v1847_v48 = vld [vmem:[%s5112_s2] sm:$0xff]  ;;  %v1856_v51 = vld [vmem:[%s5112_s2 + $0x48] sm:$0xff] }
 0x983   : > { %v1602_v16 = vpack.c.bf16 %v1600_v50, %v1600_v50  ;;  %4670 = vmatprep.subr.bf16.mxu1 %v4967_v3  ;;  %v4734_v3 = vunpack.i.l.bf16 %v4733_v63  ;;  %v1855_v49 = vld [vmem:[%s5112_s2 + $0x40] sm:$0xff]  ;;  %v1848_v50 = vld [vmem:[%s5112_s2 + $0x8] sm:$0xff] }
 0x984   : > { %2138 = vmatprep.subr.bf16.mxu0 %v4188_v43  ;;  %v1877_v43 = vld [vmem:[%s5112_s2 + $0xf0] sm:$0xff] }
 0x985   : > { %4665 = vmatmul.mubr.msk.bf16.vlgmr.msra.gmra.mxu0 %vm806_vm3, %v1602_v16  ;;  %v1726_v13 = vsel %vm1725_vm5, %v1723_v7, %v4734_v3  ;;  %v4172_v16 = vcombine.high %v1847_v48, %v1855_v49 }
 0x986   : > { %4671 = vmatpush3.bf16.msra.mxu1 %v4744_v52  ;;  %2139 = vmatpush1.bf16.msra.mxu0 %v4187_v45  ;;  %v4171_v52 = vcombine.low %v1847_v48, %v1855_v49  ;;  %v1878_v45 = vld [vmem:[%s5112_s2 + $0xf8] sm:$0xff]  ;;  %v4200_v48 = vcombine.high %v1869_v42, %v1877_v43 }
 0x987   : > { %2181 = vmatprep.subr.bf16.mxu1 %v4190_v47  ;;  %2140 = vmatprep.subr.bf16.mxu0 %v4172_v16  ;;  %v4202_v49 = vcombine.high %v1870_v44, %v1878_v45  ;;  %v1861_v16 = vld [vmem:[%s5112_s2 + $0x70] sm:$0xff] }
 0x98a   : > { %2141 = vmatpush1.bf16.msra.mxu0 %v4171_v52  ;;  %v1862_v52 = vld [vmem:[%s5112_s2 + $0x78] sm:$0xff] }
 0xa41   : > { %v1645_v53 = vpop.f32.mrf.mxu1 }
 0xa43   : > { %v4660_v54 = vpop.f32.mrf.mxu1 }
 0xa44   : > { %v4174_v54 = vcombine.high %v1848_v50, %v1856_v51 }
 0xa45   : > { %v1648_v55 = vpop.f32.mrf.mxu1  ;;  %v1693_v56 = vpop.f32.mrf.mxu0 }
 0xa46   : > { %v4736_v57 = vpack.i.bf16 %v1693_v56, %v1645_v53  ;;  %v4173_v53 = vcombine.low %v1848_v50, %v1856_v51  ;;  %v1865_v55 = vld [vmem:[%s5112_s2 + $0x90] sm:$0xff]  ;;  %v1854_v51 = vld [vmem:[%s5112_s2 + $0x38] sm:$0xff] }
 0xa47   : > { %v4661_v58 = vpop.f32.mrf.mxu1  ;;  %v4666_v59 = vpop.f32.mrf.mxu0  ;;  %v1873_v56 = vld [vmem:[%s5112_s2 + $0xd0] sm:$0xff] }
 0xa48   : > { %4737 = vrot.lane.b32.xlu0 %v4736_v57, %s4983_s20  ;;  %v1866_v57 = vld [vmem:[%s5112_s2 + $0x98] sm:$0xff]  ;;  %v4984_v58 = vmov 0   ;;  %v4192_v59 = vcombine.high %v1865_v55, %v1873_v56  ;;  %v1853_v50 = vld [vmem:[%s5112_s2 + $0x30] sm:$0xff]  ;;  %s4985_s20 = smov [#allocation2]  }
 0xa49   : > { %v1696_v60 = vpop.f32.mrf.mxu0  ;;  %2158 = vmatprep.mubr.bf16.mxu0 %v4984_v58  ;;  %s3934_s28 = sshll.u32 %s4985_s20, 4  ;;  %s3935_s28 = int_to_ptr.vmem [resolvable:$true] %s3934_s28 }
 0xa4a   : > { %v1874_v60 = vld [vmem:[%s5112_s2 + $0xd8] sm:$0xff]  ;;  %2224 = vmatprep.subr.bf16.mxu0 %v4192_v59  ;;  %v4185_v59 = vcombine.low %v1854_v51, %v1862_v52  ;;  %s4915_s18 = scalar_lea.vmem %s3935_s28, 256  ;;  %p4922_p10 = scmp.lt.s32.totalorder %s3935_s28, %s3935_s28 }
 0xa4b   : > { %v4667_v61 = vpop.f32.mrf.mxu0  ;;  %v4193_v62 = vcombine.low %v1866_v57, %v1874_v60  ;;  %v4194_v63 = vcombine.high %v1866_v57, %v1874_v60  ;;  %v4183_v57 = vcombine.low %v1853_v50, %v1861_v16  ;;  %v4745_v60 = vld [vmem:[%s5127_s0 + $0x78] sm:$0xff]   ;;  %p4916_p7 = scmp.ne.s32.totalorder %s3935_s28, %s4915_s18  ;;  %p4923_p11 = scmp.lt.s32.totalorder %s4915_s18, %s4915_s18 }
 0xa4c   : > { %v4191_v61 = vcombine.low %v1865_v55, %v1873_v56  ;;  %v4184_v55 = vcombine.high %v1853_v50, %v1861_v16  ;;  %v4186_v56 = vcombine.high %v1854_v51, %v1862_v52 }
 0xa4d   : > { %p4924_p12 = por %p4923_p11, %p4922_p10 }
 0xaba   : > { %v4738_v4 = vpop.permute.xlu0 %4737 }
 0xabb   : > { %v4740_v8 = vunpack.i.h.bf16 %v4738_v4  ;;  %v4739_v11 = vunpack.i.l.bf16 %v4738_v4 }
 0xabd   : > { %v1730_v17 = vsel %vm1728_vm6, %v1727_v15, %v4740_v8  ;;  %v1729_v19 = vsel %vm1728_vm6, %v1726_v13, %v4739_v11  ;;  %v4169_v11 = vld [vmem:[%s5715_s30] ss:$0 sm:$0xff] }
 0xabe   : > { %v1731_v20 = vpack.c.bf16 %v1730_v17, %v1729_v19  ;;  %v4170_v19 = vld [vmem:[%s5716_s29] ss:$0 sm:$0xff] }
 0xac0   : > { %4673 = vmatmul.mubr.msk.bf16.vlgmr.msra.gmra.mxu1 %vm722_vm2, %v1731_v20 }
 0xac1   : > { %2182 = vmatpush1.bf16.msra.mxu1 %v4189_v46  ;;  %2201 = vmatprep.mubr.bf16.mxu1 %v4984_v58 }
 0xac2   : > { %2183 = vmatprep.subr.bf16.mxu1 %v4174_v54  ;;  %v4201_v54 = vcombine.low %v1870_v44, %v1878_v45 }
 0xac5   : > { %2184 = vmatpush1.bf16.msra.mxu1 %v4173_v53  ;;  %v4199_v53 = vcombine.low %v1869_v42, %v1877_v43 }
 0xac6   : > { %2267 = vmatprep.subr.bf16.mxu1 %v4194_v63  ;;  %v4748_v63 = vld [vmem:[%s5127_s0 + $0xb8] sm:$0xff]  }
 0xb80   : > { %v1792_v22 = vpop.f32.mrf.mxu1 }
 0xb81   : > { %v1793_v23 = vadd.f32 %v4165_v21, %v1792_v22  ;;  %v1857_v22 = vld [vmem:[%s5112_s2 + $0x50] sm:$0xff] }
 0xb82   : > { %v4674_v18 = vpop.f32.mrf.mxu1 }
 0xb83   : > { %v1799_v26 = vadd.f32 %v4913_v24, %v1793_v23  ;;  %v1850_v23 = vld [vmem:[%s5112_s2 + $0x18] sm:$0xff] }
 0xb84   : > { %v1795_v14 = vpop.f32.mrf.mxu1  ;;  %v1858_v18 = vld [vmem:[%s5112_s2 + $0x58] sm:$0xff] }
 0xb85   : > { %v1796_v27 = vadd.f32 %v4165_v21, %v1795_v14  ;;  %v1801_v28 = vsel %vm722_vm2, %v1799_v26, 0.0  ;;  %v1849_v21 = vld [vmem:[%s5112_s2 + $0x10] sm:$0xff] }
 0xb86   : > { %1802 = vadd.xlane.f32.xlu1 %v1801_v28  ;;  %v4675_v29 = vpop.f32.mrf.mxu1  ;;  %v4178_v28 = vcombine.high %v1850_v23, %v1858_v18 }
 0xb87   : > { %v1800_v33 = vadd.f32 %v4914_v32, %v1796_v27  ;;  %v4176_v27 = vcombine.high %v1849_v21, %v1857_v22  ;;  %v1867_v29 = vld [vmem:[%s5112_s2 + $0xa0] sm:$0xff] }
 0xb88   : > { %v1875_v32 = vld [vmem:[%s5112_s2 + $0xe0] sm:$0xff] }
 0xb89   : > { %v1804_v31 = vsel %vm722_vm2, %v1800_v33, 0.0 }
 0xb8a   : > { %1805 = vadd.xlane.f32.xlu0 %v1804_v31  ;;  %v1876_v31 = vld [vmem:[%s5112_s2 + $0xe8] sm:$0xff] }
 0xc0f   : > { %v1803_v34 = vpop.xlane.xlu1 %1802 }
 0xc10   : > { %v1808_v35 = vmul.f32 0.03125, %v1803_v34  ;;  %v4175_v34 = vcombine.low %v1849_v21, %v1857_v22  ;;  %v4764_v21 = vld [vmem:[%s5127_s0 + $0x98] sm:$0xff]   ;;  %v4765_v22 = vld [vmem:[%s5127_s0 + $0x50] sm:$0xff]  }
 0xc12   : > { %v1810_v37 = vsub.f32 %v1799_v26, %v1808_v35  ;;  %v4177_v35 = vcombine.low %v1850_v23, %v1858_v18  ;;  %v4766_v23 = vld [vmem:[%s5127_s0 + $0xd0] sm:$0xff]  }
 0xc13   : > { %v1806_v36 = vpop.xlane.xlu0 %1805  ;;  %v4767_v18 = vld [vmem:[%s5127_s0 + $0x10] sm:$0xff]  }
 0xc14   : > { %v1809_v38 = vmul.f32 0.03125, %v1806_v36  ;;  %v1812_v39 = vmul.f32 %v1810_v37, %v1810_v37 }
 0xc16   : > { %v1811_v40 = vsub.f32 %v1800_v33, %v1809_v38  ;;  %v1814_v12 = vsel %vm722_vm2, %v1812_v39, 0.0  ;;  %v1868_v33 = vld [vmem:[%s5112_s2 + $0xa8] sm:$0xff]  ;;  %v1851_v38 = vld [vmem:[%s5112_s2 + $0x20] sm:$0xff] }
 0xc17   : > { %1815 = vadd.xlane.f32.xlu0 %v1814_v12  ;;  %v4198_v36 = vcombine.high %v1868_v33, %v1876_v31  ;;  %v1859_v39 = vld [vmem:[%s5112_s2 + $0x60] sm:$0xff]  ;;  %v1860_v12 = vld [vmem:[%s5112_s2 + $0x68] sm:$0xff] }
 0xc18   : > { %v1813_v41 = vmul.f32 %v1811_v40, %v1811_v40  ;;  %v4180_v9 = vcombine.high %v1851_v38, %v1859_v39  ;;  %v4179_v46 = vcombine.low %v1851_v38, %v1859_v39  ;;  %v1889_v38 = vsub.s32 1, %v5177_v25 }
 0xc19   : > { %v1897_v39 = vsub.s32 3, %v5177_v25 }
 0xc1a   : > { %v1817_v6 = vsel %vm722_vm2, %v1813_v41, 0.0  ;;  %v4195_v41 = vcombine.low %v1867_v29, %v1875_v32 }
 0xc1b   : > { %1818 = vadd.xlane.f32.xlu1 %v1817_v6  ;;  %v4197_v6 = vcombine.low %v1868_v33, %v1876_v31  ;;  %v4773_v33 = vld [vmem:[%s5127_s0 + $0x40] sm:$0xff]  }
 0xc1c   : > { %v4774_v31 = vld [vmem:[%s5127_s0 + $0xc0] sm:$0xff]  }
 0xca0   : > { %v1816_v0 = vpop.xlane.xlu0 %1815 }
 0xca1   : > { %v1820_v1 = vmul.f32 0.03125, %v1816_v0  ;;  %v4749_v0 = vld [vmem:[%s5127_s0 + $0x70] sm:$0xff]  }
 0xca3   : > { %v1822_v2 = vadd.f32 1e-05, %v1820_v1  ;;  %v4750_v1 = vld [vmem:[%s5127_s0 + $0xf0] sm:$0xff]  }
 0xca4   : > { %v1819_v3 = vpop.xlane.xlu1 %1818 }
 0xca5   : > { %4905 = vrsqrt.f32 %v1822_v2  ;;  %v1821_v4 = vmul.f32 0.03125, %v1819_v3  ;;  %v4752_v2 = vld [vmem:[%s5127_s0 + $0xb0] sm:$0xff]   ;;  %v4753_v3 = vld [vmem:[%s5127_s0 + $0x68] sm:$0xff]  }
 0xca7   : > { %v1823_v5 = vadd.f32 1e-05, %v1821_v4  ;;  %v4754_v4 = vld [vmem:[%s5127_s0 + $0xe8] sm:$0xff]  }
 0xca9   : > { %4907 = vrsqrt.f32 %v1823_v5  ;;  %v4755_v5 = vld [vmem:[%s5127_s0 + $0x28] sm:$0xff]  }
 0xcb2   : > { %v4906_v7 = vpop.eup %4905 }
 0xcb3   : > { %v1826_v8 = vmul.f32 %v4906_v7, %v1810_v37  ;;  %v4196_v37 = vcombine.high %v1867_v29, %v1875_v32  ;;  %v4756_v7 = vld [vmem:[%s5127_s0 + $0xa8] sm:$0xff]  }
 0xcb4   : > { %v4771_v29 = vld [vmem:[%s5127_s0 + $0x8] sm:$0xff]  }
 0xcb5   : > { %v1835_v15 = vmul.f32 %v4169_v11, %v1826_v8  ;;  %v4757_v8 = vld [vmem:[%s5127_s0 + $0x60] sm:$0xff]   ;;  %v4772_v32 = vld [vmem:[%s5127_s0 + $0x88] sm:$0xff]  }
 0xcb6   : > { %v4908_v13 = vpop.eup %4907 }
 0xcb7   : > { %v1827_v17 = vmul.f32 %v4908_v13, %v1811_v40  ;;  %v5362_v24 = vadd.f32 %v4170_v19, %v1835_v15  ;;  %v1852_v40 = vld [vmem:[%s5112_s2 + $0x28] sm:$0xff]  ;;  %v4759_v13 = vld [vmem:[%s5127_s0 + $0x20] sm:$0xff]  }
 0xcb8   : > { %v4182_v10 = vcombine.high %v1852_v40, %v1860_v12  ;;  %v4181_v47 = vcombine.low %v1852_v40, %v1860_v12  ;;  %v4760_v15 = vld [vmem:[%s5127_s0 + $0xa0] sm:$0xff]   ;;  %v1893_v40 = vsub.s32 2, %v5177_v25 }
 0xcb9   : > { %v1836_v20 = vmul.f32 %v4169_v11, %v1827_v17  ;;  %v4758_v11 = vld [vmem:[%s5127_s0 + $0xe0] sm:$0xff]   ;;  %v4761_v17 = vld [vmem:[%s5127_s0 + $0x58] sm:$0xff]  }
 0xcba   : > { %v5446_v12 = vld [vmem:[%s5117_s4] sm:$0xff] }
 0xcbb   : > { %v5364_v26 = vadd.f32 %v4170_v19, %v1836_v20  ;;  %v4762_v19 = vld [vmem:[%s5127_s0 + $0xd8] sm:$0xff]   ;;  %v1886_v42 = vrot.slane %v5446_v12, %v5184_v30  ;;  %v1894_v43 = vrot.slane %v5446_v12, %v1893_v40 }
 0xcbc   : > { %v4763_v20 = vld [vmem:[%s5127_s0 + $0x18] sm:$0xff]  }
 0xcbd   : > { %v5368_v14 = vpack.c.bf16 %v5364_v26, %v5362_v24 }
 0xcbf   : > { %4203 = vmatmul.mubr.msk.bf16.vlgmr.msra.gmra.mxu0 %vm722_vm2, %v5368_v14  ;;  %4204 = vmatmul.mubr.msk.bf16.vlgmr.msra.gmra.mxu1 %vm722_vm2, %v5368_v14 }
 0xcc0   : > { %2225 = vmatpush1.bf16.msra.mxu0 %v4191_v61  ;;  %2268 = vmatpush1.bf16.msra.mxu1 %v4193_v62  ;;  %v4746_v61 = vld [vmem:[%s5127_s0 + $0xf8] sm:$0xff]  }
 0xcc1   : > { %2226 = vmatprep.subr.bf16.mxu0 %v4176_v27  ;;  %2269 = vmatprep.subr.bf16.mxu1 %v4178_v28  ;;  %v4747_v62 = vld [vmem:[%s5127_s0 + $0x38] sm:$0xff]   ;;  %v4769_v27 = vld [vmem:[%s5127_s0 + $0x48] sm:$0xff]  }
 0xcc2   : > { %2244 = vmatprep.mubr.bf16.mxu0 %v4984_v58  ;;  %2287 = vmatprep.mubr.bf16.mxu1 %v4984_v58  ;;  %v4770_v28 = vld [vmem:[%s5127_s0 + $0xc8] sm:$0xff]  }
 0xcc4   : > { %2227 = vmatpush1.bf16.msra.mxu0 %v4175_v34  ;;  %2270 = vmatpush1.bf16.msra.mxu1 %v4177_v35  ;;  %v4775_v34 = vld [vmem:[%s5127_s0] sm:$0xff]  }
 0xcc5   : > { %2310 = vmatprep.subr.bf16.mxu0 %v4196_v37  ;;  %2353 = vmatprep.subr.bf16.mxu1 %v4198_v36  ;;  %v4776_v35 = vld [vmem:[%s5127_s0 + $0x80] sm:$0xff]   ;;  %v4777_v37 = vld [vmem:[%s5127_s0 + $0x178] sm:$0xff]  }
 0xcc6   : > { %v4778_v36 = vld [vmem:[%s5127_s0 + $0x1f8] sm:$0xff]  }
 0xcc7   : > { %4205 = vmatmul.mubr.msk.bf16.vlgmr.msra.gmra.mxu0 %vm722_vm2, %v5368_v14  ;;  %4206 = vmatmul.mubr.msk.bf16.vlgmr.msra.gmra.mxu1 %vm722_vm2, %v5368_v14 }
 0xcc8   : > { %2311 = vmatpush1.bf16.msra.mxu0 %v4195_v41  ;;  %2354 = vmatpush1.bf16.msra.mxu1 %v4197_v6 }
 0xcc9   : > { %2312 = vmatprep.subr.bf16.mxu0 %v4180_v9  ;;  %2355 = vmatprep.subr.bf16.mxu1 %v4182_v10  ;;  %v1890_v9 = vrot.slane %v5446_v12, %v1889_v38  ;;  %v1898_v10 = vrot.slane %v5446_v12, %v1897_v39 }
 0xcca   : > { %2330 = vmatprep.mubr.bf16.mxu0 %v4984_v58  ;;  %2373 = vmatprep.mubr.bf16.mxu1 %v4984_v58 }
 0xccc   : > { %2313 = vmatpush1.bf16.msra.mxu0 %v4179_v46  ;;  %2356 = vmatpush1.bf16.msra.mxu1 %v4181_v47 }
 0xccd   : > { %2396 = vmatprep.subr.bf16.mxu0 %v4200_v48  ;;  %2439 = vmatprep.subr.bf16.mxu1 %v4202_v49  ;;  %v1905_v48 = vsub.s32 5, %v5177_v25  ;;  %v1913_v49 = vsub.s32 7, %v5177_v25 }
 0xccf   : > { %4207 = vmatmul.mubr.msk.bf16.vlgmr.msra.gmra.mxu0 %vm722_vm2, %v5368_v14  ;;  %4208 = vmatmul.mubr.msk.bf16.vlgmr.msra.gmra.mxu1 %vm722_vm2, %v5368_v14 }
 0xcd0   : > { %2397 = vmatpush1.bf16.msra.mxu0 %v4199_v53  ;;  %2440 = vmatpush1.bf16.msra.mxu1 %v4201_v54 }
 0xcd1   : > { %2398 = vmatprep.subr.bf16.mxu0 %v4184_v55  ;;  %2441 = vmatprep.subr.bf16.mxu1 %v4186_v56 }
 0xcd2   : > { %2416 = vmatprep.mubr.bf16.mxu0 %v4984_v58  ;;  %2459 = vmatprep.mubr.bf16.mxu1 %v4984_v58  ;;  %v4751_v58 = vld [vmem:[%s5127_s0 + $0x30] sm:$0xff]  }
 0xcd4   : > { %2399 = vmatpush1.bf16.msra.mxu0 %v4183_v57  ;;  %2442 = vmatpush1.bf16.msra.mxu1 %v4185_v59 }
 0xcd5   : > { %4388 = vmatprep.subr.bf16.mxu0 %v4745_v60  ;;  %4410 = vmatprep.subr.bf16.mxu1 %v4746_v61 }
 0xcd7   : > { %4209 = vmatmul.mubr.msk.bf16.vlgmr.msra.gmra.mxu0 %vm722_vm2, %v5368_v14  ;;  %4210 = vmatmul.mubr.msk.bf16.vlgmr.msra.gmra.mxu1 %vm722_vm2, %v5368_v14  ;;  %v4768_v14 = vld [vmem:[%s5127_s0 + $0x90] sm:$0xff]  }
 0xcd8   : > { %4389 = vmatpush3.bf16.msra.mxu0 %v4747_v62  ;;  %4411 = vmatpush3.bf16.msra.mxu1 %v4748_v63 }
 0xcd9   : > { %4390 = vmatprep.subr.bf16.mxu0 %v4749_v0  ;;  %4412 = vmatprep.subr.bf16.mxu1 %v4750_v1  ;;  %v1906_v0 = vrot.slane %v5446_v12, %v1905_v48  ;;  %v1914_v1 = vrot.slane %v5446_v12, %v1913_v49 }
 0xcdc   : > { %4391 = vmatpush3.bf16.msra.mxu0 %v4751_v58  ;;  %4413 = vmatpush3.bf16.msra.mxu1 %v4752_v2 }
 0xcdd   : > { %4392 = vmatprep.subr.bf16.mxu0 %v4753_v3  ;;  %4414 = vmatprep.subr.bf16.mxu1 %v4754_v4 }
 0xce0   : > { %4393 = vmatpush3.bf16.msra.mxu0 %v4755_v5  ;;  %4415 = vmatpush3.bf16.msra.mxu1 %v4756_v7 }
 0xce1   : > { %4394 = vmatprep.subr.bf16.mxu0 %v4757_v8  ;;  %4416 = vmatprep.subr.bf16.mxu1 %v4758_v11 }
 0xce4   : > { %4395 = vmatpush3.bf16.msra.mxu0 %v4759_v13  ;;  %4417 = vmatpush3.bf16.msra.mxu1 %v4760_v15 }
 0xce5   : > { %4396 = vmatprep.subr.bf16.mxu0 %v4761_v17  ;;  %4418 = vmatprep.subr.bf16.mxu1 %v4762_v19  ;;  %v4779_v17 = vld [vmem:[%s5127_s0 + $0x138] sm:$0xff]  }
 0xce6   : > { %v4780_v19 = vld [vmem:[%s5127_s0 + $0x1b8] sm:$0xff]  }
 0xce8   : > { %4397 = vmatpush3.bf16.msra.mxu0 %v4763_v20  ;;  %4419 = vmatpush3.bf16.msra.mxu1 %v4764_v21 }
 0xce9   : > { %4398 = vmatprep.subr.bf16.mxu0 %v4765_v22  ;;  %4420 = vmatprep.subr.bf16.mxu1 %v4766_v23 }
 0xcec   : > { %4399 = vmatpush3.bf16.msra.mxu0 %v4767_v18  ;;  %4421 = vmatpush3.bf16.msra.mxu1 %v4768_v14  ;;  %v4781_v18 = vld [vmem:[%s5127_s0 + $0x170] sm:$0xff]  }
 0xced   : > { %4400 = vmatprep.subr.bf16.mxu0 %v4769_v27  ;;  %4422 = vmatprep.subr.bf16.mxu1 %v4770_v28  ;;  %v4782_v14 = vld [vmem:[%s5127_s0 + $0x1f0] sm:$0xff]  }
 0xcf0   : > { %4401 = vmatpush3.bf16.msra.mxu0 %v4771_v29  ;;  %4423 = vmatpush3.bf16.msra.mxu1 %v4772_v32 }
 0xcf1   : > { %4402 = vmatprep.subr.bf16.mxu0 %v4773_v33  ;;  %4424 = vmatprep.subr.bf16.mxu1 %v4774_v31 }
 0xcf4   : > { %4403 = vmatpush3.bf16.msra.mxu0 %v4775_v34  ;;  %4425 = vmatpush3.bf16.msra.mxu1 %v4776_v35  ;;  %v4783_v34 = vld [vmem:[%s5127_s0 + $0x130] sm:$0xff]  }
 0xcf5   : > { %4432 = vmatprep.subr.bf16.mxu0 %v4777_v37  ;;  %4454 = vmatprep.subr.bf16.mxu1 %v4778_v36  ;;  %v4784_v35 = vld [vmem:[%s5127_s0 + $0x1b0] sm:$0xff]   ;;  %v4785_v37 = vld [vmem:[%s5127_s0 + $0x168] sm:$0xff]  }
 0xd7f   : > { %v2160_v41 = vpop.f32.mrf.mxu0  ;;  %v2203_v6 = vpop.f32.mrf.mxu1 }
 0xd80   : > { %v2161_v53 = vadd.f32 %v2160_v41, %v1886_v42  ;;  %v2204_v54 = vadd.f32 %v2203_v6, %v1894_v43 }
 0xd81   : > { %v2162_v44 = vpop.f32.mrf.mxu0  ;;  %v2205_v45 = vpop.f32.mrf.mxu1 }
 0xd82   : > { %v2163_v50 = vadd.f32 %v2162_v44, %v1890_v9  ;;  %v2206_v16 = vadd.f32 %v2205_v45, %v1898_v10  ;;  %v2470_v5 = vmax.f32 %v2161_v53, 0.0  ;;  %v2472_v7 = vmax.f32 %v2204_v54, 0.0  ;;  %v4787_v44 = vld [vmem:[%s5127_s0 + $0x128] sm:$0xff]   ;;  %v4793_v53 = vld [vmem:[%s5127_s0 + $0x158] sm:$0xff]  }
 0xd83   : > { %v2164_v46 = vpop.f32.mrf.mxu0  ;;  %v2207_v47 = vpop.f32.mrf.mxu1  ;;  %v4788_v45 = vld [vmem:[%s5127_s0 + $0x1a8] sm:$0xff]   ;;  %v4794_v54 = vld [vmem:[%s5127_s0 + $0x1d8] sm:$0xff]  }
 0xd84   : > { %v2165_v51 = vadd.f32 %v2164_v46, %v1886_v42  ;;  %v2208_v52 = vadd.f32 %v2207_v47, %v1894_v43  ;;  %v2471_v58 = vmax.f32 %v2163_v50, 0.0  ;;  %v2473_v2 = vmax.f32 %v2206_v16, 0.0  ;;  %v4789_v46 = vld [vmem:[%s5127_s0 + $0x160] sm:$0xff]  }
 0xd85   : > { %v2166_v55 = vpop.f32.mrf.mxu0  ;;  %v2209_v56 = vpop.f32.mrf.mxu1  ;;  %v4790_v47 = vld [vmem:[%s5127_s0 + $0x1e0] sm:$0xff]  }
 0xd86   : > { %v2167_v57 = vadd.f32 %v2166_v55, %v1890_v9  ;;  %v2210_v59 = vadd.f32 %v2209_v56, %v1898_v10  ;;  %v2486_v60 = vmax.f32 %v2165_v51, 0.0  ;;  %v2488_v61 = vmax.f32 %v2208_v52, 0.0  ;;  %v4786_v10 = vld [vmem:[%s5127_s0 + $0x1e8] sm:$0xff]   ;;  %v4791_v16 = vld [vmem:[%s5127_s0 + $0x120] sm:$0xff]   ;;  %v4795_v56 = vld [vmem:[%s5127_s0 + $0x118] sm:$0xff]  }
 0xd87   : > { %v5461_v62 = vpop.f32.mrf.mxu0  ;;  %v5463_v63 = vpop.f32.mrf.mxu1  ;;  %v4792_v52 = vld [vmem:[%s5127_s0 + $0x1a0] sm:$0xff]  }
 0xd88   : > { %v2487_v3 = vmax.f32 %v2167_v57, 0.0  ;;  %v2489_v4 = vmax.f32 %v2210_v59, 0.0  ;;  %v2502_v20 = vpack.c.bf16 %v2486_v60, %v2470_v5  ;;  %v2504_v21 = vpack.c.bf16 %v2488_v61, %v2472_v7  ;;  %v4796_v59 = vld [vmem:[%s5127_s0 + $0x198] sm:$0xff]   ;;  %v4797_v60 = vld [vmem:[%s5127_s0 + $0x150] sm:$0xff]   ;;  %v4801_v5 = vld [vmem:[%s5127_s0 + $0x148] sm:$0xff]  }
 0xd89   : > { %v2248_v8 = vpop.f32.mrf.mxu0  ;;  %v2291_v11 = vpop.f32.mrf.mxu1  ;;  %v4798_v61 = vld [vmem:[%s5127_s0 + $0x1d0] sm:$0xff]   ;;  %v4802_v7 = vld [vmem:[%s5127_s0 + $0x1c8] sm:$0xff]  }
 0xd8a   : > { %v2503_v13 = vpack.c.bf16 %v2487_v3, %v2471_v58  ;;  %v2505_v15 = vpack.c.bf16 %v2489_v4, %v2473_v2  ;;  %v2249_v27 = vadd.f32 %v2248_v8, %v1906_v0  ;;  %v2292_v28 = vadd.f32 %v2291_v11, %v1914_v1  ;;  %v4799_v2 = vld [vmem:[%s5127_s0 + $0x110] sm:$0xff]  }
 0xd8b   : > { %v5473_v22 = vpop.f32.mrf.mxu0  ;;  %v5475_v23 = vpop.f32.mrf.mxu1  ;;  %v4800_v4 = vld [vmem:[%s5127_s0 + $0x190] sm:$0xff]  }
 0xd8c   : > { %3581 = vmatprep.mubr.bf16.mxu0 %v2503_v13  ;;  %3622 = vmatprep.mubr.bf16.mxu1 %v2505_v15  ;;  %v2475_v36 = vmax.f32 %v2249_v27, 0.0  ;;  %v2477_v41 = vmax.f32 %v2292_v28, 0.0  ;;  %v5516_v13 = vld [vmem:[%s5117_s4 + $0x8] sm:$0xff] }
 0xd8d   : > { %v2252_v29 = vpop.f32.mrf.mxu0  ;;  %v2295_v32 = vpop.f32.mrf.mxu1  ;;  %3582 = vmatmul.mubr.bf16.vlgmr.msra.gmra.mxu0 %v2502_v20  ;;  %3623 = vmatmul.mubr.bf16.vlgmr.msra.gmra.mxu1 %v2504_v21  ;;  %v1922_v20 = vrot.slane %v5516_v13, %v1889_v38  ;;  %v1930_v27 = vrot.slane %v5516_v13, %v1897_v39 }
 0xd8e   : > { %v2253_v33 = vadd.f32 %v2252_v29, %v1906_v0  ;;  %v2296_v31 = vadd.f32 %v2295_v32, %v1914_v1  ;;  %4433 = vmatpush3.bf16.msra.mxu0 %v4779_v17  ;;  %4455 = vmatpush3.bf16.msra.mxu1 %v4780_v19  ;;  %v1901_v0 = vsub.s32 4, %v5177_v25  ;;  %v1909_v1 = vsub.s32 6, %v5177_v25  ;;  %v4803_v17 = vld [vmem:[%s5127_s0 + $0x108] sm:$0xff]   ;;  %v4871_v25 = vld [vmem:[%s5127_s0 + $0x300] sm:$0xff]  }
 0xd8f   : > { %4434 = vmatprep.subr.bf16.mxu0 %v4781_v18  ;;  %4456 = vmatprep.subr.bf16.mxu1 %v4782_v14  ;;  %v5487_v50 = vpop.f32.mrf.mxu0  ;;  %v5490_v51 = vpop.f32.mrf.mxu1  ;;  %v4804_v18 = vld [vmem:[%s5127_s0 + $0x188] sm:$0xff]   ;;  %v4805_v14 = vld [vmem:[%s5127_s0 + $0x140] sm:$0xff]  }
 0xd90   : > { %v2491_v6 = vmax.f32 %v2253_v33, 0.0  ;;  %v2493_v9 = vmax.f32 %v2296_v31, 0.0  ;;  %v1902_v8 = vrot.slane %v5446_v12, %v1901_v0  ;;  %v1910_v11 = vrot.slane %v5446_v12, %v1909_v1  ;;  %v4807_v33 = vld [vmem:[%s5127_s0 + $0x100] sm:$0xff]  }
 0xd91   : > { %v2334_v55 = vpop.f32.mrf.mxu0  ;;  %v2377_v57 = vpop.f32.mrf.mxu1 }
 0xd92   : > { %v2507_v42 = vpack.c.bf16 %v2491_v6, %v2475_v36  ;;  %v2509_v43 = vpack.c.bf16 %v2493_v9, %v2477_v41  ;;  %4435 = vmatpush3.bf16.msra.mxu0 %v4783_v34  ;;  %4457 = vmatpush3.bf16.msra.mxu1 %v4784_v35  ;;  %v2251_v19 = vadd.f32 %v5473_v22, %v1902_v8  ;;  %v4806_v22 = vld [vmem:[%s5127_s0 + $0x1c0] sm:$0xff]   ;;  %v4809_v35 = vld [vmem:[%s5127_s0 + $0x278] sm:$0xff]  }
 0xd93   : > { %4436 = vmatprep.subr.bf16.mxu0 %v4785_v37  ;;  %4458 = vmatprep.subr.bf16.mxu1 %v4786_v10  ;;  %v5501_v58 = vpop.f32.mrf.mxu0  ;;  %v5504_v3 = vpop.f32.mrf.mxu1  ;;  %v2294_v12 = vadd.f32 %v5475_v23, %v1910_v11  ;;  %v2247_v28 = vadd.f32 %v5461_v62, %v1902_v8  ;;  %v2290_v38 = vadd.f32 %v5463_v63, %v1910_v11  ;;  %v4808_v23 = vld [vmem:[%s5127_s0 + $0x180] sm:$0xff]   ;;  %v4810_v36 = vld [vmem:[%s5127_s0 + $0x2f8] sm:$0xff]  }
 0xd94   : > { %3663 = vmatprep.mubr.bf16.mxu0 %v2507_v42  ;;  %3704 = vmatprep.mubr.bf16.mxu1 %v2509_v43  ;;  %v2490_v31 = vmax.f32 %v2251_v19, 0.0  ;;  %v2335_v34 = vadd.f32 %v2334_v55, %v1922_v20  ;;  %v2378_v37 = vadd.f32 %v2377_v57, %v1930_v27  ;;  %v4811_v9 = vld [vmem:[%s5127_s0 + $0x238] sm:$0xff]   ;;  %v4817_v55 = vld [vmem:[%s5127_s0 + $0x268] sm:$0xff]  }
 0xd95   : > { %v2338_v15 = vpop.f32.mrf.mxu0  ;;  %v2381_v21 = vpop.f32.mrf.mxu1  ;;  %v2492_v39 = vmax.f32 %v2294_v12, 0.0  ;;  %v2474_v62 = vmax.f32 %v2247_v28, 0.0  ;;  %v2476_v63 = vmax.f32 %v2290_v38, 0.0  ;;  %v4812_v43 = vld [vmem:[%s5127_s0 + $0x2b8] sm:$0xff]   ;;  %v4819_v57 = vld [vmem:[%s5127_s0 + $0x228] sm:$0xff]   ;;  %v4831_v12 = vld [vmem:[%s5127_s0 + $0x210] sm:$0xff]   ;;  %v1918_v38 = vrot.slane %v5516_v13, %v5184_v30 }
 0xd96   : > { %4437 = vmatpush3.bf16.msra.mxu0 %v4787_v44  ;;  %4459 = vmatpush3.bf16.msra.mxu1 %v4788_v45  ;;  %v2339_v29 = vadd.f32 %v2338_v15, %v1922_v20  ;;  %v2382_v32 = vadd.f32 %v2381_v21, %v1930_v27  ;;  %v2479_v42 = vmax.f32 %v2335_v34, 0.0  ;;  %v2481_v45 = vmax.f32 %v2378_v37, 0.0  ;;  %v4825_v8 = vld [vmem:[%s5127_s0 + $0x258] sm:$0xff]   ;;  %v4829_v21 = vld [vmem:[%s5127_s0 + $0x250] sm:$0xff]   ;;  %v4833_v28 = vld [vmem:[%s5127_s0 + $0x248] sm:$0xff]  }
 0xd97   : > { %4438 = vmatprep.subr.bf16.mxu0 %v4789_v46  ;;  %4460 = vmatprep.subr.bf16.mxu1 %v4790_v47  ;;  %v2506_v10 = vpack.c.bf16 %v2490_v31, %v2474_v62  ;;  %v2508_v44 = vpack.c.bf16 %v2492_v39, %v2476_v63  ;;  %v4813_v46 = vld [vmem:[%s5127_s0 + $0x270] sm:$0xff]   ;;  %v4826_v11 = vld [vmem:[%s5127_s0 + $0x2d8] sm:$0xff]   ;;  %v4835_v31 = vld [vmem:[%s5127_s0 + $0x208] sm:$0xff]   ;;  %v2337_v34 = vadd.f32 %v5501_v58, %v1918_v38 }
 0xd98   : > { %v2495_v41 = vmax.f32 %v2339_v29, 0.0  ;;  %v2497_v6 = vmax.f32 %v2382_v32, 0.0  ;;  %v4828_v20 = vld [vmem:[%s5127_s0 + $0x298] sm:$0xff]   ;;  %v4834_v29 = vld [vmem:[%s5127_s0 + $0x2c8] sm:$0xff]   ;;  %v1926_v32 = vrot.slane %v5516_v13, %v1893_v40  ;;  %v4837_v30 = vld [vmem:[%s5127_s0 + $0x240] sm:$0xff]   ;;  %v1946_v40 = vrot.slane %v5516_v13, %v1913_v49 }
 0xd99   : > { %v4836_v39 = vld [vmem:[%s5127_s0 + $0x288] sm:$0xff]   ;;  %v4838_v58 = vld [vmem:[%s5127_s0 + $0x2c0] sm:$0xff]  }
 0xd9a   : > { %4439 = vmatpush3.bf16.msra.mxu0 %v4791_v16  ;;  %4461 = vmatpush3.bf16.msra.mxu1 %v4792_v52  ;;  %v2511_v47 = vpack.c.bf16 %v2495_v41, %v2479_v42  ;;  %v4814_v16 = vld [vmem:[%s5127_s0 + $0x2f0] sm:$0xff]   ;;  %v2513_v52 = vpack.c.bf16 %v2497_v6, %v2481_v45  ;;  %v2380_v37 = vadd.f32 %v5504_v3, %v1926_v32  ;;  %v4839_v63 = vld [vmem:[%s5127_s0 + $0x200] sm:$0xff]   ;;  %v2494_v6 = vmax.f32 %v2337_v34, 0.0 }
 0xd9b   : > { %4440 = vmatprep.subr.bf16.mxu0 %v4793_v53  ;;  %4462 = vmatprep.subr.bf16.mxu1 %v4794_v54  ;;  %v4815_v53 = vld [vmem:[%s5127_s0 + $0x230] sm:$0xff]   ;;  %v4840_v3 = vld [vmem:[%s5127_s0 + $0x280] sm:$0xff]   ;;  %v1934_v34 = vrot.slane %v5516_v13, %v1901_v0 }
 0xd9c   : > { %v4816_v54 = vld [vmem:[%s5127_s0 + $0x2b0] sm:$0xff]   ;;  %v2496_v49 = vmax.f32 %v2380_v37, 0.0  ;;  %v4869_v37 = vld [vmem:[%s5127_s0 + $0x340] sm:$0xff]  }
 0xd9e   : > { %4441 = vmatpush3.bf16.msra.mxu0 %v4795_v56  ;;  %4463 = vmatpush3.bf16.msra.mxu1 %v4796_v59  ;;  %v4818_v56 = vld [vmem:[%s5127_s0 + $0x2e8] sm:$0xff]  }
 0xd9f   : > { %4442 = vmatprep.subr.bf16.mxu0 %v4797_v60  ;;  %4464 = vmatprep.subr.bf16.mxu1 %v4798_v61  ;;  %v4820_v59 = vld [vmem:[%s5127_s0 + $0x2a8] sm:$0xff]   ;;  %v4821_v60 = vld [vmem:[%s5127_s0 + $0x260] sm:$0xff]  }
 0xda0   : > { %v4822_v61 = vld [vmem:[%s5127_s0 + $0x2e0] sm:$0xff]  }
 0xda2   : > { %4443 = vmatpush3.bf16.msra.mxu0 %v4799_v2  ;;  %4465 = vmatpush3.bf16.msra.mxu1 %v4800_v4  ;;  %v5548_v2 = vpop.f32.mrf.mxu0  ;;  %v4823_v4 = vld [vmem:[%s5127_s0 + $0x220] sm:$0xff]  }
 0xda3   : > { %4444 = vmatprep.subr.bf16.mxu0 %v4801_v5  ;;  %4466 = vmatprep.subr.bf16.mxu1 %v4802_v7  ;;  %v5551_v5 = vpop.f32.mrf.mxu1  ;;  %v4824_v7 = vld [vmem:[%s5127_s0 + $0x2a0] sm:$0xff]  }
 0xda4   : > { %v2420_v15 = vpop.f32.mrf.mxu0 }
 0xda5   : > { %v2463_v19 = vpop.f32.mrf.mxu1 }
 0xda6   : > { %4445 = vmatpush3.bf16.msra.mxu0 %v4803_v17  ;;  %4467 = vmatpush3.bf16.msra.mxu1 %v4804_v18  ;;  %v4827_v17 = vld [vmem:[%s5127_s0 + $0x218] sm:$0xff]   ;;  %v4830_v18 = vld [vmem:[%s5127_s0 + $0x2d0] sm:$0xff]   ;;  %v2464_v42 = vadd.f32 %v2463_v19, %v1946_v40  ;;  %v4855_v19 = vld [vmem:[%s5127_s0 + $0x320] sm:$0xff]  }
 0xda7   : > { %4446 = vmatprep.subr.bf16.mxu0 %v4805_v14  ;;  %4468 = vmatprep.subr.bf16.mxu1 %v4806_v22  ;;  %v5560_v14 = vpop.f32.mrf.mxu0  ;;  %v5563_v27 = vpop.f32.mrf.mxu1  ;;  %v4832_v22 = vld [vmem:[%s5127_s0 + $0x290] sm:$0xff]  }
 0xdaa   : > { %4447 = vmatpush3.bf16.msra.mxu0 %v4807_v33  ;;  %4469 = vmatpush3.bf16.msra.mxu1 %v4808_v23  ;;  %v2424_v33 = vpop.f32.mrf.mxu0  ;;  %v1938_v23 = vrot.slane %v5516_v13, %v1905_v48  ;;  %v2376_v48 = vadd.f32 %v5490_v51, %v1926_v32  ;;  %v4864_v32 = vld [vmem:[%s5127_s0 + $0x390] sm:$0xff]  }
 0xdab   : > { %4476 = vmatprep.subr.bf16.mxu0 %v4809_v35  ;;  %4498 = vmatprep.subr.bf16.mxu1 %v4810_v36  ;;  %v2467_v35 = vpop.f32.mrf.mxu1  ;;  %v2333_v36 = vadd.f32 %v5487_v50, %v1918_v38  ;;  %v4863_v38 = vld [vmem:[%s5127_s0 + $0x310] sm:$0xff]  }
 0xdac   : > { %v2425_v62 = vadd.f32 %v2424_v33, %v1938_v23  ;;  %v2468_v41 = vadd.f32 %v2467_v35, %v1946_v40  ;;  %v2480_v51 = vmax.f32 %v2376_v48, 0.0  ;;  %v4865_v33 = vld [vmem:[%s5127_s0 + $0x348] sm:$0xff]  }
 0xdad   : > { %3664 = vmatmul.mubr.bf16.vlgmr.msra.gmra.mxu0 %v2506_v10  ;;  %3705 = vmatmul.mubr.bf16.vlgmr.msra.gmra.mxu1 %v2508_v44  ;;  %v4841_v10 = vld [vmem:[%s5127_s0 + $0x378] sm:$0xff]   ;;  %v2478_v50 = vmax.f32 %v2333_v36, 0.0  ;;  %v4867_v35 = vld [vmem:[%s5127_s0 + $0x308] sm:$0xff]   ;;  %v2419_v36 = vadd.f32 %v5548_v2, %v1934_v34 }
 0xdae   : > { %4477 = vmatpush3.bf16.msra.mxu0 %v4811_v9  ;;  %3745 = vmatprep.mubr.bf16.mxu0 %v2511_v47  ;;  %v2421_v9 = vadd.f32 %v2420_v15, %v1938_v23  ;;  %v2499_v44 = vmax.f32 %v2425_v62, 0.0  ;;  %v2501_v45 = vmax.f32 %v2468_v41, 0.0  ;;  %v4853_v15 = vld [vmem:[%s5127_s0 + $0x360] sm:$0xff]   ;;  %v1942_v23 = vrot.slane %v5516_v13, %v1909_v1 }
 0xdaf   : > { %4499 = vmatpush3.bf16.msra.mxu1 %v4812_v43  ;;  %3786 = vmatprep.mubr.bf16.mxu1 %v2513_v52  ;;  %v4842_v43 = vld [vmem:[%s5127_s0 + $0x3f8] sm:$0xff]   ;;  %v2510_v47 = vpack.c.bf16 %v2494_v6, %v2478_v50  ;;  %v4872_v13 = vld [vmem:[%s5127_s0 + $0x380] sm:$0xff]  }
 0xdb0   : > { %4478 = vmatprep.subr.bf16.mxu0 %v4813_v46  ;;  %4500 = vmatprep.subr.bf16.mxu1 %v4814_v16  ;;  %v4843_v46 = vld [vmem:[%s5127_s0 + $0x338] sm:$0xff]   ;;  %v2483_v16 = vmax.f32 %v2421_v9, 0.0  ;;  %v2466_v40 = vadd.f32 %v5563_v27, %v1942_v23  ;;  %v2462_v0 = vadd.f32 %v5551_v5, %v1942_v23 }
 0xdb1   : > { %v4844_v52 = vld [vmem:[%s5127_s0 + $0x3b8] sm:$0xff]  }
 0xdb2   : > { %4479 = vmatpush3.bf16.msra.mxu0 %v4815_v53  ;;  %v2512_v53 = vpack.c.bf16 %v2496_v49, %v2480_v51  ;;  %v2500_v62 = vmax.f32 %v2466_v40, 0.0  ;;  %v2484_v48 = vmax.f32 %v2462_v0, 0.0 }
 0xdb3   : > { %4501 = vmatpush3.bf16.msra.mxu1 %v4816_v54  ;;  %4480 = vmatprep.subr.bf16.mxu0 %v4817_v55  ;;  %v2485_v54 = vmax.f32 %v2464_v42, 0.0  ;;  %v4845_v55 = vld [vmem:[%s5127_s0 + $0x370] sm:$0xff]  }
 0xdb4   : > { %4502 = vmatprep.subr.bf16.mxu1 %v4818_v56  ;;  %v2515_v56 = vpack.c.bf16 %v2499_v44, %v2483_v16  ;;  %v2516_v27 = vpack.c.bf16 %v2500_v62, %v2484_v48  ;;  %v4211_v16 = vld [vmem:[%s678_s14] ss:$0 sm:$0xff]  ;;  %s5717_s14 = sld [smem:[#allocation6_spill]] }
 0xdb6   : > { %4481 = vmatpush3.bf16.msra.mxu0 %v4819_v57  ;;  %v4846_v57 = vld [vmem:[%s5127_s0 + $0x3f0] sm:$0xff]  }
 0xdb7   : > { %4503 = vmatpush3.bf16.msra.mxu1 %v4820_v59  ;;  %4482 = vmatprep.subr.bf16.mxu0 %v4821_v60  ;;  %v2517_v59 = vpack.c.bf16 %v2501_v45, %v2485_v54  ;;  %v4847_v60 = vld [vmem:[%s5127_s0 + $0x330] sm:$0xff]  }
 0xdb8   : > { %4504 = vmatprep.subr.bf16.mxu1 %v4822_v61  ;;  %v4848_v61 = vld [vmem:[%s5127_s0 + $0x3b0] sm:$0xff]  }
 0xdba   : > { %4483 = vmatpush3.bf16.msra.mxu0 %v4823_v4  ;;  %v4849_v4 = vld [vmem:[%s5127_s0 + $0x368] sm:$0xff]   ;;  %s5718_s23 = sadd.s32 4294967295, %s5717_s14  }
 0xdbb   : > { %4505 = vmatpush3.bf16.msra.mxu1 %v4824_v7  ;;  %4484 = vmatprep.subr.bf16.mxu0 %v4825_v8  ;;  %v4850_v7 = vld [vmem:[%s5127_s0 + $0x3e8] sm:$0xff]   ;;  %p5655_p6 = scmp.eq.s32.totalorder %s5718_s23, 1 }
 0xdbc   : > { %4506 = vmatprep.subr.bf16.mxu1 %v4826_v11  ;;  %v4851_v8 = vld [vmem:[%s5127_s0 + $0x328] sm:$0xff]  }
 0xdbd   : > { %v4852_v11 = vld [vmem:[%s5127_s0 + $0x3a8] sm:$0xff]   ;;  %p4917_p8 = pnand %p4916_p7, %p5655_p6 }
 0xdbe   : > { %4485 = vmatpush3.bf16.msra.mxu0 %v4827_v17  ;;  %v4854_v17 = vld [vmem:[%s5127_s0 + $0x3e0] sm:$0xff]  }
 0xdbf   : > { %4507 = vmatpush3.bf16.msra.mxu1 %v4828_v20  ;;  %4486 = vmatprep.subr.bf16.mxu0 %v4829_v21  ;;  %v4856_v20 = vld [vmem:[%s5127_s0 + $0x3a0] sm:$0xff]   ;;  %v4857_v21 = vld [vmem:[%s5127_s0 + $0x358] sm:$0xff]   ;;  %p4918_p9 = pneg %p4917_p8 }
 0xdc0   : > { %4508 = vmatprep.subr.bf16.mxu1 %v4830_v18  ;;  %v4858_v18 = vld [vmem:[%s5127_s0 + $0x3d8] sm:$0xff]  }
 0xdc1   : > { %p4925_p13 = pnand %p4924_p12, %p4918_p9 }
 0xdc2   : > { %4487 = vmatpush3.bf16.msra.mxu0 %v4831_v12  ;;  %v4859_v12 = vld [vmem:[%s5127_s0 + $0x318] sm:$0xff]  }
 0xdc3   : > { %4509 = vmatpush3.bf16.msra.mxu1 %v4832_v22  ;;  %4488 = vmatprep.subr.bf16.mxu0 %v4833_v28  ;;  %v4860_v22 = vld [vmem:[%s5127_s0 + $0x398] sm:$0xff]   ;;  %v4861_v28 = vld [vmem:[%s5127_s0 + $0x350] sm:$0xff]  }
 0xdc4   : > { %4510 = vmatprep.subr.bf16.mxu1 %v4834_v29  ;;  %v4862_v29 = vld [vmem:[%s5127_s0 + $0x3d0] sm:$0xff]  }
 0xdc6   : > { %4489 = vmatpush3.bf16.msra.mxu0 %v4835_v31  ;;  %v4866_v31 = vld [vmem:[%s5127_s0 + $0x3c8] sm:$0xff]  }
 0xdc7   : > { %4511 = vmatpush3.bf16.msra.mxu1 %v4836_v39  ;;  %4490 = vmatprep.subr.bf16.mxu0 %v4837_v30  ;;  %v2423_v39 = vadd.f32 %v5560_v14, %v1934_v34  ;;  %v4868_v30 = vld [vmem:[%s5127_s0 + $0x388] sm:$0xff]   ;;  %v2482_v14 = vmax.f32 %v2419_v36, 0.0 }
 0xdc8   : > { %4512 = vmatprep.subr.bf16.mxu1 %v4838_v58  ;;  %v4870_v58 = vld [vmem:[%s5127_s0 + $0x3c0] sm:$0xff]  }
 0xdc9   : > { %v2498_v1 = vmax.f32 %v2423_v39, 0.0 }
 0xdca   : > { %4491 = vmatpush3.bf16.msra.mxu0 %v4839_v63 }
 0xdcb   : > { %4513 = vmatpush3.bf16.msra.mxu1 %v4840_v3  ;;  %4520 = vmatprep.subr.bf16.mxu0 %v4841_v10  ;;  %v2514_v41 = vpack.c.bf16 %v2498_v1, %v2482_v14 }
 0xdcc   : > { %4542 = vmatprep.subr.bf16.mxu1 %v4842_v43 }
 0xdcd   : > { %3746 = vmatmul.mubr.bf16.vlgmr.msra.gmra.mxu0 %v2510_v47 }
 0xdce   : > { %3787 = vmatmul.mubr.bf16.vlgmr.msra.gmra.mxu1 %v2512_v53  ;;  %4521 = vmatpush3.bf16.msra.mxu0 %v4843_v46 }
 0xdcf   : > { %3827 = vmatprep.mubr.bf16.mxu0 %v2515_v56  ;;  %4543 = vmatpush3.bf16.msra.mxu1 %v4844_v52 }
 0xdd0   : > { %3868 = vmatprep.mubr.bf16.mxu1 %v2517_v59  ;;  %4522 = vmatprep.subr.bf16.mxu0 %v4845_v55 }
 0xdd1   : > { %4544 = vmatprep.subr.bf16.mxu1 %v4846_v57 }
 0xdd2   : > { %4523 = vmatpush3.bf16.msra.mxu0 %v4847_v60 }
 0xdd3   : > { %4545 = vmatpush3.bf16.msra.mxu1 %v4848_v61  ;;  %4524 = vmatprep.subr.bf16.mxu0 %v4849_v4 }
 0xdd4   : > { %4546 = vmatprep.subr.bf16.mxu1 %v4850_v7 }
 0xdd6   : > { %4525 = vmatpush3.bf16.msra.mxu0 %v4851_v8 }
 0xdd7   : > { %4547 = vmatpush3.bf16.msra.mxu1 %v4852_v11  ;;  %4526 = vmatprep.subr.bf16.mxu0 %v4853_v15 }
 0xdd8   : > { %4548 = vmatprep.subr.bf16.mxu1 %v4854_v17 }
 0xdda   : > { %4527 = vmatpush3.bf16.msra.mxu0 %v4855_v19 }
 0xddb   : > { %4549 = vmatpush3.bf16.msra.mxu1 %v4856_v20  ;;  %4528 = vmatprep.subr.bf16.mxu0 %v4857_v21 }
 0xddc   : > { %4550 = vmatprep.subr.bf16.mxu1 %v4858_v18 }
 0xdde   : > { %4529 = vmatpush3.bf16.msra.mxu0 %v4859_v12 }
 0xddf   : > { %4551 = vmatpush3.bf16.msra.mxu1 %v4860_v22  ;;  %4530 = vmatprep.subr.bf16.mxu0 %v4861_v28 }
 0xde0   : > { %4552 = vmatprep.subr.bf16.mxu1 %v4862_v29 }
 0xde2   : > { %4531 = vmatpush3.bf16.msra.mxu0 %v4863_v38 }
 0xde3   : > { %4553 = vmatpush3.bf16.msra.mxu1 %v4864_v32  ;;  %4532 = vmatprep.subr.bf16.mxu0 %v4865_v33 }
 0xde4   : > { %4554 = vmatprep.subr.bf16.mxu1 %v4866_v31 }
 0xde6   : > { %4533 = vmatpush3.bf16.msra.mxu0 %v4867_v35 }
 0xde7   : > { %4555 = vmatpush3.bf16.msra.mxu1 %v4868_v30  ;;  %4534 = vmatprep.subr.bf16.mxu0 %v4869_v37 }
 0xde8   : > { %4556 = vmatprep.subr.bf16.mxu1 %v4870_v58 }
 0xdea   : > { %4535 = vmatpush3.bf16.msra.mxu0 %v4871_v25 }
 0xdeb   : > { %4557 = vmatpush3.bf16.msra.mxu1 %v4872_v13 }
 0xded   : > { %3828 = vmatmul.mubr.bf16.vlgmr.msra.gmra.mxu0 %v2514_v41 }
 0xdee   : > { %3869 = vmatmul.mubr.bf16.vlgmr.msra.gmra.mxu1 %v2516_v27 }
 0xe4d   : > { %v4404_v63 = vpop.f32.mrf.mxu0  ;;  %v4426_v2 = vpop.f32.mrf.mxu1 }
 0xe4f   : > { %v4405_v5 = vpop.f32.mrf.mxu0  ;;  %v4427_v6 = vpop.f32.mrf.mxu1 }
 0xe50   : > { %v4406_v47 = vadd.f32 %v4405_v5, %v4404_v63  ;;  %v4428_v59 = vadd.f32 %v4427_v6, %v4426_v2 }
 0xe51   : > { %v4407_v9 = vpop.f32.mrf.mxu0  ;;  %v4429_v3 = vpop.f32.mrf.mxu1 }
 0xe52   : > { %v3584_v54 = vadd.f32 %v4406_v47, %v4211_v16 }
 0xe53   : > { %v4408_v10 = vpop.f32.mrf.mxu0  ;;  %v4430_v42 = vpop.f32.mrf.mxu1 }
 0xe54   : > { %v4409_v55 = vadd.f32 %v4408_v10, %v4407_v9  ;;  %v3625_v61 = vadd.f32 %v4428_v59, %v3584_v54  ;;  %v4431_v11 = vadd.f32 %v4430_v42, %v4429_v3 }
 0xe56   : > { %v3587_v4 = vadd.f32 %v4409_v55, %v4211_v16 }
 0xe58   : > { %v3628_v19 = vadd.f32 %v4431_v11, %v3587_v4 }
 0xe6d   : > { %v4448_v49 = vpop.f32.mrf.mxu0  ;;  %v4470_v43 = vpop.f32.mrf.mxu1 }
 0xe6f   : > { %v4449_v50 = vpop.f32.mrf.mxu0  ;;  %v4471_v44 = vpop.f32.mrf.mxu1 }
 0xe70   : > { %v4450_v60 = vadd.f32 %v4449_v50, %v4448_v49  ;;  %v4472_v20 = vadd.f32 %v4471_v44, %v4470_v43 }
 0xe71   : > { %v4451_v51 = vpop.f32.mrf.mxu0  ;;  %v4473_v45 = vpop.f32.mrf.mxu1 }
 0xe72   : > { %v3666_v15 = vadd.f32 %v4450_v60, %v3625_v61  ;;  %v4341_v60 = vld [vmem:[%s684_s26] ss:$0 sm:$0xff] }
 0xe73   : > { %v4452_v46 = vpop.f32.mrf.mxu0  ;;  %v4474_v53 = vpop.f32.mrf.mxu1 }
 0xe74   : > { %v4453_v17 = vadd.f32 %v4452_v46, %v4451_v51  ;;  %v3707_v22 = vadd.f32 %v4472_v20, %v3666_v15  ;;  %v4475_v29 = vadd.f32 %v4474_v53, %v4473_v45 }
 0xe76   : > { %v3669_v28 = vadd.f32 %v4453_v17, %v3628_v19 }
 0xe78   : > { %v3710_v34 = vadd.f32 %v4475_v29, %v3669_v28 }
 0xe8d   : > { %v4492_v52 = vpop.f32.mrf.mxu0 }
 0xe8e   : > { %v4514_v56 = vpop.f32.mrf.mxu1 }
 0xe8f   : > { %v4493_v57 = vpop.f32.mrf.mxu0 }
 0xe90   : > { %v4515_v7 = vpop.f32.mrf.mxu1  ;;  %v4494_v21 = vadd.f32 %v4493_v57, %v4492_v52  ;;  %v4340_v57 = vld [vmem:[%s681_s22] ss:$0 sm:$0xff] }
 0xe91   : > { %v4495_v8 = vpop.f32.mrf.mxu0  ;;  %v4516_v23 = vadd.f32 %v4515_v7, %v4514_v56 }
 0xe92   : > { %v4517_v18 = vpop.f32.mrf.mxu1  ;;  %v3748_v38 = vadd.f32 %v4494_v21, %v3707_v22 }
 0xe93   : > { %v4496_v12 = vpop.f32.mrf.mxu0 }
 0xe94   : > { %v4497_v32 = vadd.f32 %v4496_v12, %v4495_v8  ;;  %v4518_v33 = vpop.f32.mrf.mxu1  ;;  %v3789_v30 = vadd.f32 %v4516_v23, %v3748_v38 }
 0xe95   : > { %v4519_v0 = vadd.f32 %v4518_v33, %v4517_v18 }
 0xe96   : > { %v3751_v37 = vadd.f32 %v4497_v32, %v3710_v34 }
 0xe98   : > { %v3792_v14 = vadd.f32 %v4519_v0, %v3751_v37 }
 0xead   : > { %v4536_v31 = vpop.f32.mrf.mxu0 }
 0xeae   : > { %v4558_v35 = vpop.f32.mrf.mxu1 }
 0xeaf   : > { %v4537_v39 = vpop.f32.mrf.mxu0 }
 0xeb0   : > { %v4538_v40 = vadd.f32 %v4537_v39, %v4536_v31  ;;  %v4559_v58 = vpop.f32.mrf.mxu1 }
 0xeb1   : > { %v4539_v36 = vpop.f32.mrf.mxu0  ;;  %v4560_v1 = vadd.f32 %v4559_v58, %v4558_v35 }
 0xeb2   : > { %v3830_v25 = vadd.f32 %v4538_v40, %v3789_v30  ;;  %v4561_v13 = vpop.f32.mrf.mxu1 }
 0xeb3   : > { %v4540_v62 = vpop.f32.mrf.mxu0 }
 0xeb4   : > { %v3871_v48 = vadd.f32 %v4560_v1, %v3830_v25  ;;  %v4541_v41 = vadd.f32 %v4540_v62, %v4539_v36  ;;  %v4562_v27 = vpop.f32.mrf.mxu1 }
 0xeb5   : > { %v4563_v2 = vadd.f32 %v4562_v27, %v4561_v13 }
 0xeb6   : > { %v3833_v63 = vadd.f32 %v4541_v41, %v3792_v14  ;;  %v3877_v5 = vadd.f32 %v3871_v48, %v5362_v24 }
 0xeb8   : > { %v3874_v6 = vadd.f32 %v4563_v2, %v3833_v63  ;;  %v3879_v9 = vsel %vm722_vm2, %v3877_v5, 0.0 }
 0xeb9   : > { %3880 = vadd.xlane.f32.xlu0 %v3879_v9 }
 0xeba   : > { %v3878_v3 = vadd.f32 %v3874_v6, %v5364_v26 }
 0xebc   : > { %v3882_v10 = vsel %vm722_vm2, %v3878_v3, 0.0 }
 0xebd   : > { %3883 = vadd.xlane.f32.xlu1 %v3882_v10 }
 0xf42   : > { %v3881_v49 = vpop.xlane.xlu0 %3880 }
 0xf43   : > { %v3885_v42 = vmul.f32 0.03125, %v3881_v49 }
 0xf45   : > { %v3887_v43 = vsub.f32 %v3877_v5, %v3885_v42 }
 0xf46   : > { %v3884_v50 = vpop.xlane.xlu1 %3883 }
 0xf47   : > { %v3886_v44 = vmul.f32 0.03125, %v3884_v50  ;;  %v3889_v51 = vmul.f32 %v3887_v43, %v3887_v43 }
 0xf49   : > { %v3888_v45 = vsub.f32 %v3878_v3, %v3886_v44  ;;  %v3891_v46 = vsel %vm722_vm2, %v3889_v51, 0.0 }
 0xf4a   : > { %3892 = vadd.xlane.f32.xlu0 %v3891_v46 }
 0xf4b   : > { %v3890_v24 = vmul.f32 %v3888_v45, %v3888_v45 }
 0xf4d   : > { %v3894_v47 = vsel %vm722_vm2, %v3890_v24, 0.0 }
 0xf4e   : > { %3895 = vadd.xlane.f32.xlu1 %v3894_v47 }
 0xfd3   : > { %v3893_v26 = vpop.xlane.xlu0 %3892 }
 0xfd4   : > { %v3897_v16 = vmul.f32 0.03125, %v3893_v26 }
 0xfd6   : > { %v3899_v52 = vadd.f32 1e-05, %v3897_v16 }
 0xfd7   : > { %v3896_v53 = vpop.xlane.xlu1 %3895 }
 0xfd8   : > { %4909 = vrsqrt.f32 %v3899_v52  ;;  %v3898_v54 = vmul.f32 0.03125, %v3896_v53 }
 0xfda   : > { %v3900_v55 = vadd.f32 1e-05, %v3898_v54 }
 0xfdc   : > { %4911 = vrsqrt.f32 %v3900_v55 }
 0xfe5   : > { %v4910_v56 = vpop.eup %4909 }
 0xfe6   : > { %v3903_v59 = vmul.f32 %v4910_v56, %v3887_v43 }
 0xfe8   : > { %v3912_v61 = vmul.f32 %v4340_v57, %v3903_v59 }
 0xfe9   : > { %v4912_v4 = vpop.eup %4911 }
 0xfea   : > { %v3904_v7 = vmul.f32 %v4912_v4, %v3888_v45  ;;  %v3921_v8 = vadd.f32 %v4341_v60, %v3912_v61 }
 0xfec   : > { %v3913_v11 = vmul.f32 %v4340_v57, %v3904_v7  ;;  %3923 = vst.msk [vmem:[#allocation2] sm:$0xff] %vm722_vm2, %v3921_v8 }
 0xfee   : > { %v3922_v15 = vadd.f32 %v4341_v60, %v3913_v11 }
 0xff0   : > { %3924 = vst.msk [vmem:[#allocation2 + $0x8] sm:$0xff] %vm722_vm2, %v3922_v15 }
 0xff1   : > { %4928 = shalt.err (!%p4925_p13)
}
 0xff2   : > { %s4986_s22 = smov 128   ;;  %s5720_s27 = sld [smem:[#allocation13_spill]] }
 0xff8   : > { %4677 = dma.vmem_to_hbm [thread:$0]  (%p5655_p6), %s3935_s28, 256, %s5720_s27, [#allocation3], %s4986_s22, %s4986_s22, %s4981_s16  }
 0xff9   : > { %4952 = dma.done.wait (%p5655_p6), [#allocation3], 256  }
 0xffa   : > { %4954 = vsyncadd (%p5655_p6), [#allocation3], 4294967040 }
 0xffb PF: > { %s5721_s30 = sld [smem:[#allocation6_spill]] }
 0xffc   : > { %s5722_s29 = sld [smem:[#allocation5_spill]] }
0x1001   : > { %s25_s15 = sadd.s32 1, %s5721_s30   ;;  %s5723_s30 = sld [smem:[#allocation7_spill]] }
0x1002   : > { %p22_p0 = scmp.ge.s32.totalorder %s25_s15, 4  }
0x1004   :  { %24 = sbr.rel (!%p22_p0) target bundleno = 9 (0x9), region = 147 }
0x1009   :  { %3950 = vsyncpa [#allocation3], 1 }
0x100a   :  { %3952 = vsyncpa [#allocation3 + $0x1], 1 }

</bundles_post_ra>
